<compile_context>
chip_gen: v7x
topology: tpu7x:2x2x1
jax: 0.10.0
libtpu: 0.0.40
codegen_flags: <defaults>
</compile_context>

<pallas_src>
import jax
import jax.numpy as jnp
from jax import lax
from jax.experimental import pallas as pl
from jax.experimental.pallas import tpu as pltpu

_BN_EPS = 1e-5
_LANE = 128
_COL_OFF = 8          # sublane-aligned start of the hidden interior in the scratch


# ----------------------------- small helpers -----------------------------

def _round_up(x, m):
    return (x + m - 1) // m * m


def _fold_bn(bn):
    scale = bn["gamma"] / jnp.sqrt(bn["var"] + _BN_EPS)
    bias = bn["beta"] - bn["mean"] * scale
    return scale, bias


def _pad2(a, rows, cols):
    return jnp.pad(a, ((0, rows - a.shape[0]), (0, cols - a.shape[1])))


def _vmem_capacity_bytes():
    """Per-generation VMEM capacity (v5e/v6e 128 MiB, v7x 64 MiB), with a
    v7x-safe fallback if the query is unavailable."""
    try:
        cap = getattr(pltpu.get_tpu_info(), "vmem_capacity_bytes", None)
        if cap:
            return int(cap)
    except Exception:
        pass
    return 64 * 1024 * 1024


def _pick_row_tile(h_out, H, W, w_out, stride, cin_pad, hid_pad, cout_pad,
                   weight_bytes, budget_bytes):
    """Largest divisor of h_out whose per-block working set fits the budget,
    keeping >= 2 row blocks whenever h_out allows (DMA pipeline + v7x's 2 TCs)."""
    wp = _round_up(_COL_OFF + W + 1, 8)
    best = 1
    for th in range(1, h_out + 1):
        if h_out % th:
            continue
        if h_out >= 2 and h_out // th < 2:
            continue                                   # keep >= 2 row blocks
        core = th * stride
        win = core - stride + 3
        est = (2 * (H + 2) * W * cin_pad * 2           # input image, dbl-buffered bf16
               + 2 * th * w_out * cout_pad * 2         # output block, dbl-buffered bf16
               + 2 * weight_bytes                      # weights/biases, dbl-buffered
               + win * wp * hid_pad * 2                # hidden halo scratch (bf16)
               + win * W * hid_pad * 6                 # expand result f32 + bf16 copy
               + th * wp * hid_pad * 4                 # one live f32 tap strip
               + 4 * th * w_out * hid_pad * 4          # depthwise partials / d
               + th * w_out * (2 * hid_pad + 6 * cout_pad))   # project temporaries
        if est <= budget_bytes:
            best = max(best, th)
    return best


# ----------------------------- parameter setup -----------------------------

def _init_bn(key, c):
    k1, k2, k3, k4 = jax.random.split(key, 4)
    return {
        "gamma": jax.random.uniform(k1, (c,), jnp.float32, 0.5, 1.5),
        "beta": 0.1 * jax.random.normal(k2, (c,), jnp.float32),
        "mean": 0.1 * jax.random.normal(k3, (c,), jnp.float32),
        "var": jax.random.uniform(k4, (c,), jnp.float32, 0.5, 1.5),
    }


def init_inverted_residual_params(key, inp, oup, expand_ratio):
    hidden = int(round(inp * expand_ratio))
    ks = jax.random.split(key, 6)
    params = {}
    if expand_ratio != 1:
        # PyTorch 1x1 conv weight (hidden, inp, 1, 1) -> matmul weight (inp, hidden)
        params["w1"] = 0.3 * jax.random.normal(ks[0], (inp, hidden), jnp.float32)
        params["bn1"] = _init_bn(ks[1], hidden)
    # PyTorch depthwise weight (hidden, 1, 3, 3) -> (9, hidden) taps-per-channel
    params["wd"] = 0.3 * jax.random.normal(ks[2], (9, hidden), jnp.float32)
    params["bn2"] = _init_bn(ks[3], hidden)
    # PyTorch 1x1 conv weight (oup, hidden, 1, 1) -> (hidden, oup)
    params["w3"] = 0.3 * jax.random.normal(ks[4], (hidden, oup), jnp.float32)
    params["bn3"] = _init_bn(ks[5], oup)
    return params


# ----------------------------- fused forward -----------------------------

def inverted_residual_forward(x_nchw, params, *, inp, oup, stride, expand_ratio):
    assert stride in (1, 2)
    N, C, H, W = x_nchw.shape
    assert C == inp
    # TODO(synk): odd spatial sizes with stride 2 (asymmetric halo) not handled.
    assert H % stride == 0 and W % stride == 0
    hidden = int(round(inp * expand_ratio))
    has_expand = expand_ratio != 1
    use_res = stride == 1 and inp == oup

    s = stride
    h_out, w_out = H // s, W // s
    cin_pad = _round_up(inp, _LANE)
    hid_pad = _round_up(hidden, _LANE)
    cout_pad = _round_up(oup, _LANE)

    # ---- parameter prep: fold BN scale into conv weights, zero-pad channels to
    # lane-dense multiples of 128, cast matmul weights to bf16 (tiny host ops).
    if has_expand:
        s1, b1 = _fold_bn(params["bn1"])
        w1p = _pad2(params["w1"] * s1[None, :], cin_pad, hid_pad).astype(jnp.bfloat16)
        b1p = _pad2(b1[None, :], 1, hid_pad).astype(jnp.float32)
    s2, b2 = _fold_bn(params["bn2"])
    wdp = _pad2(params["wd"] * s2[None, :], 9, hid_pad).astype(jnp.float32)
    b2p = _pad2(b2[None, :], 1, hid_pad).astype(jnp.float32)
    s3, b3 = _fold_bn(params["bn3"])
    w3p = _pad2(params["w3"] * s3[None, :], hid_pad, cout_pad).astype(jnp.bfloat16)
    b3p = _pad2(b3[None, :], 1, cout_pad).astype(jnp.float32)

    weight_bytes = (9 * hid_pad * 4 + hid_pad * 4
                    + hid_pad * cout_pad * 2 + cout_pad * 4)
    if has_expand:
        weight_bytes += cin_pad * hid_pad * 2 + hid_pad * 4

    # NCHW -> NHWC, lane-dense channel pad, one zero row top/bottom so the expand
    # matmul covers core+halo rows in a single dot; bf16 activations.
    # TODO(synk): when stacking blocks, keep activations padded-NHWC bf16
    #             end-to-end and drop these per-block transposes / pads / slices.
    x = jnp.transpose(x_nchw, (0, 2, 3, 1)).astype(jnp.bfloat16)
    x = jnp.pad(x, ((0, 0), (1, 1), (0, 0), (0, cin_pad - inp)))
    Hp = H + 2

    cap = _vmem_capacity_bytes()
    th = _pick_row_tile(h_out, H, W, w_out, s, cin_pad, hid_pad, cout_pad,
                        weight_bytes, int(cap * 0.7))
    n_rb = h_out // th
    core = th * s                          # input rows consumed per block (no halo)
    win = core - s + 3                     # hidden rows (incl. halo) in the scratch
    wp = _round_up(_COL_OFF + W + 1, 8)    # scratch row width (sublane-aligned)
    co = _COL_OFF

    def kernel(*refs):
        if has_expand:
            (x_ref, w1_ref, b1_ref, wd_ref, b2_ref, w3_ref, b3_ref,
             o_ref, xp_ref) = refs
        else:
            x_ref, wd_ref, b2_ref, w3_ref, b3_ref, o_ref, xp_ref = refs

        r = pl.program_id(1)
        row0 = pl.multiple_of(r * core, core)   # window start (padded-row coords)

        # Zero the depthwise halo columns of the hidden scratch (cheap: one column
        # per side); the interior is fully overwritten by the expand store below.
        zcol = jnp.zeros((win, 1, hid_pad), jnp.bfloat16)
        xp_ref[:, co - 1:co, :] = zcol
        xp_ref[:, co + W:co + W + 1, :] = zcol

        # --- expand 1x1 + folded BN + ReLU6 over core+halo rows in ONE matmul ---
        xwin = x_ref[pl.ds(row0, win), :, :]              # (win, W, cin_pad) bf16
        if has_expand:
            h = jnp.dot(xwin.reshape(win * W, cin_pad), w1_ref[...],
                        preferred_element_type=jnp.float32)
            h = jnp.clip(h + b1_ref[...], 0.0, 6.0)
            hwin = h.astype(jnp.bfloat16).reshape(win, W, hid_pad)
        else:
            hwin = xwin                    # expand_ratio == 1: depthwise on input
        xp_ref[0:win, co:co + W, :] = hwin

        if has_expand:
            # The depthwise conv zero-pads the *hidden* tensor: window rows that
            # came from the zero-padded input rows expanded to clip(b1, 0, 6) and
            # must be overwritten with zeros at the image borders only.
            zrow = jnp.zeros((1, W, hid_pad), jnp.bfloat16)

            @pl.when(r == 0)
            def _top():
                xp_ref[0:1, co:co + W, :] = zrow

            if s == 1:
                @pl.when(r == pl.num_programs(1) - 1)
                def _bottom():
                    xp_ref[win - 1:win, co:co + W, :] = zrow

        # --- 3x3 depthwise (stride s) + folded-BN bias + ReLU6, f32 accum ------
        wd = wd_ref[...]                                   # (9, hid_pad) f32
        bias = b2_ref[...].reshape(1, 1, hid_pad)

        if s == 1:
            # One strip load + cast per kernel row; kw shifts are value slices of
            # the already-loaded strip.  Per-kh partials break the serial chain.
            def kh_partial(kh):
                strip = xp_ref[kh:kh + th, :, :].astype(jnp.float32)  # (th, wp, hid)
                part = None
                for kw in range(3):
                    w = wd[3 * kh + kw:3 * kh + kw + 1, :].reshape(1, 1, hid_pad)
                    t = strip[:, co - 1 + kw:co - 1 + kw + W, :] * w
                    part = t if part is None else part + t
                return part

            acc = (kh_partial(0) + bias) + kh_partial(1) + kh_partial(2)
        else:
            # TODO(synk): stride-2 strided-window loads are not exercised by the
            #             stride-1 demo below.
            acc = bias
            for k in range(9):
                kh, kw = divmod(k, 3)
                t = xp_ref[pl.ds(kh, th, s), pl.ds(co - 1 + kw, w_out, s), :]
                acc = acc + t.astype(jnp.float32) * wd[k:k + 1, :].reshape(1, 1, hid_pad)

        d = jnp.clip(acc, 0.0, 6.0)

        # --- project 1x1 + folded-BN bias (+ residual); lane-dense bf16 store ---
        y = jnp.dot(d.reshape(th * w_out, hid_pad).astype(jnp.bfloat16),
                    w3_ref[...], preferred_element_type=jnp.float32)
        y = y + b3_ref[...]
        if use_res:
            xres = x_ref[pl.ds(row0 + 1, core), :, :]      # core rows (no halo)
            y = y + xres.reshape(th * w_out, cin_pad).astype(jnp.float32)
        o_ref[...] = y.reshape(th, w_out, cout_pad).astype(o_ref.dtype)

    in_specs = [pl.BlockSpec((None, Hp, W, cin_pad), lambda n, r: (n, 0, 0, 0))]
    args = [x]
    if has_expand:
        in_specs += [pl.BlockSpec((cin_pad, hid_pad), lambda n, r: (0, 0)),
                     pl.BlockSpec((1, hid_pad), lambda n, r: (0, 0))]
        args += [w1p, b1p]
    in_specs += [pl.BlockSpec((9, hid_pad), lambda n, r: (0, 0)),
                 pl.BlockSpec((1, hid_pad), lambda n, r: (0, 0)),
                 pl.BlockSpec((hid_pad, cout_pad), lambda n, r: (0, 0)),
                 pl.BlockSpec((1, cout_pad), lambda n, r: (0, 0))]
    args += [wdp, b2p, w3p, b3p]

    # Advisory cost: true (unpadded) channel counts, actual moved bytes.
    flops = (2 * 9 * N * h_out * w_out * hidden
             + 2 * N * h_out * w_out * hidden * oup)
    if has_expand:
        flops += 2 * N * H * W * inp * hidden
    bytes_accessed = (N * Hp * W * cin_pad * 2
                      + N * h_out * w_out * cout_pad * 2
                      + weight_bytes)

    out = pl.pallas_call(
        kernel,
        out_shape=jax.ShapeDtypeStruct((N, h_out, w_out, cout_pad), jnp.bfloat16),
        grid=(N, n_rb),
        in_specs=in_specs,
        out_specs=pl.BlockSpec((None, th, w_out, cout_pad), lambda n, r: (n, r, 0, 0)),
        scratch_shapes=[pltpu.VMEM((win, wp, hid_pad), jnp.bfloat16)],
        compiler_params=pltpu.CompilerParams(
            dimension_semantics=("parallel", "parallel"),
            vmem_limit_bytes=int(cap * 0.9)),
        cost_estimate=pl.CostEstimate(flops=int(flops), transcendentals=0,
                                      bytes_accessed=int(bytes_accessed)),
    )(*args)

    out = out[..., :oup]                       # drop lane padding
    # TODO(synk): keep padded-NHWC bf16 when stacking blocks; NCHW transpose is
    #             only for interface parity with the PyTorch module.
    return jnp.transpose(out, (0, 3, 1, 2))


# ----------------------------- pure-JAX reference -----------------------------

def _reference_forward(x_nchw, params, *, inp, oup, stride, expand_ratio):
    """Pure-JAX reference mirroring the kernel's bf16-operand / f32-accumulate
    precision (so the comparison isolates kernel correctness)."""
    hidden = int(round(inp * expand_ratio))
    use_res = stride == 1 and inp == oup
    x = jnp.transpose(x_nchw, (0, 2, 3, 1)).astype(jnp.float32)
    xb = x.astype(jnp.bfloat16)

    if expand_ratio != 1:
        s1, b1 = _fold_bn(params["bn1"])
        w1f = (params["w1"] * s1[None, :]).astype(jnp.bfloat16)
        h = jnp.einsum("nhwc,cd->nhwd", xb, w1f,
                       preferred_element_type=jnp.float32)
        h = jnp.clip(h + b1[None, None, None, :], 0.0, 6.0)
    else:
        h = x
    hb = h.astype(jnp.bfloat16).astype(jnp.float32)

    s2, b2 = _fold_bn(params["bn2"])
    wdf = (params["wd"] * s2[None, :]).reshape(3, 3, 1, hidden)
    d = lax.conv_general_dilated(
        hb, wdf, window_strides=(stride, stride), padding=((1, 1), (1, 1)),
        dimension_numbers=("NHWC", "HWIO", "NHWC"), feature_group_count=hidden)
    d = jnp.clip(d + b2[None, None, None, :], 0.0, 6.0)

    s3, b3 = _fold_bn(params["bn3"])
    w3f = (params["w3"] * s3[None, :]).astype(jnp.bfloat16)
    o = jnp.einsum("nhwc,cd->nhwd", d.astype(jnp.bfloat16), w3f,
                   preferred_element_type=jnp.float32)
    o = o + b3[None, None, None, :]
    if use_res:
        o = o + xb.astype(jnp.float32)
    return jnp.transpose(o, (0, 3, 1, 2))


# ----------------------------- main -----------------------------

def _run_config(key, *, N, H, W, inp, oup, stride, expand_ratio):
    kx, kp = jax.random.split(key)
    x = jax.random.normal(kx, (N, inp, H, W), jnp.float32)    # NCHW like PyTorch
    params = init_inverted_residual_params(kp, inp, oup, expand_ratio)

    out = inverted_residual_forward(
        x, params, inp=inp, oup=oup, stride=stride, expand_ratio=expand_ratio)
    out = jax.block_until_ready(out)

    ref = _reference_forward(
        x, params, inp=inp, oup=oup, stride=stride, expand_ratio=expand_ratio)
    assert out.shape == (N, oup, H // stride, W // stride), out.shape
    outf = out.astype(jnp.float32)
    # bf16 output -> ~0.4% final-rounding error covered by rtol.
    if not jnp.allclose(outf, ref, rtol=1e-2, atol=5e-2):
        err = float(jnp.max(jnp.abs(outf - ref)))
        raise AssertionError(f"Pallas output != reference (max abs err {err:.3e})")


if __name__ == "__main__":
    key = jax.random.PRNGKey(0)
    k1, k2 = jax.random.split(key)
    # expand conv + residual path (hidden = 128 -> naturally lane-dense)
    _run_config(k1, N=2, H=16, W=16, inp=32, oup=32, stride=1, expand_ratio=4)
    # expand_ratio == 1 branch (no expand conv), still with residual
    _run_config(k2, N=2, H=16, W=16, inp=32, oup=32, stride=1, expand_ratio=1)
    print("KERNEL_OK")
</pallas_src>

<mosaic_0001>
module attributes {stable_mosaic.version = 11 : i64} {
  func.func @kernel(%arg0: i32, %arg1: i32, %arg2: memref<1x18x16x128xbf16, #tpu.memory_space<vmem>>, %arg3: memref<128x128xbf16, #tpu.memory_space<vmem>>, %arg4: memref<1x128xf32, #tpu.memory_space<vmem>>, %arg5: memref<9x128xf32, #tpu.memory_space<vmem>>, %arg6: memref<1x128xf32, #tpu.memory_space<vmem>>, %arg7: memref<128x128xbf16, #tpu.memory_space<vmem>>, %arg8: memref<1x128xf32, #tpu.memory_space<vmem>>, %arg9: memref<1x8x16x128xbf16, #tpu.memory_space<vmem>>, %arg10: memref<10x32x128xbf16, #tpu.memory_space<vmem>>) attributes {dimension_semantics = [#tpu.dimension_semantics<parallel>, #tpu.dimension_semantics<parallel>], iteration_bounds = array<i64: 2, 2>, scalar_prefetch = 0 : i64, scratch_operands = 1 : i64, tpu.core_type = #tpu.core_type<tc>, window_params = [{transform_indices = @transform_0, window_bounds = array<i64: 1, 18, 16, 128>}, {pipeline_mode = #tpu.pipeline_mode<synchronous>, transform_indices = @transform_1, window_bounds = array<i64: 128, 128>}, {pipeline_mode = #tpu.pipeline_mode<synchronous>, transform_indices = @transform_2, window_bounds = array<i64: 1, 128>}, {pipeline_mode = #tpu.pipeline_mode<synchronous>, transform_indices = @transform_3, window_bounds = array<i64: 9, 128>}, {pipeline_mode = #tpu.pipeline_mode<synchronous>, transform_indices = @transform_4, window_bounds = array<i64: 1, 128>}, {pipeline_mode = #tpu.pipeline_mode<synchronous>, transform_indices = @transform_5, window_bounds = array<i64: 128, 128>}, {pipeline_mode = #tpu.pipeline_mode<synchronous>, transform_indices = @transform_6, window_bounds = array<i64: 1, 128>}, {transform_indices = @transform_7, window_bounds = array<i64: 1, 8, 16, 128>}]} {
    %c8_i32 = arith.constant 8 : i32
    %0 = arith.muli %arg1, %c8_i32 : i32
    %1 = tpu.assume_multiple %0, 8 : i32
    %cst = arith.constant 0.000000e+00 : bf16
    %2 = vector.broadcast %cst : bf16 to vector<10x1x128xbf16>
    %c0 = arith.constant 0 : index
    %c7 = arith.constant 7 : index
    %c0_0 = arith.constant 0 : index
    %3 = vector.load %arg10[%c0, %c7, %c0_0] : memref<10x32x128xbf16, #tpu.memory_space<vmem>>, vector<10x1x128xbf16>
    tpu.vector_store %arg10[%c0, %c7, %c0_0], %2 {strides = array<i32>} : memref<10x32x128xbf16, #tpu.memory_space<vmem>>, vector<10x1x128xbf16>,
    %c0_1 = arith.constant 0 : index
    %c24 = arith.constant 24 : index
    %c0_2 = arith.constant 0 : index
    %4 = vector.load %arg10[%c0_1, %c24, %c0_2] : memref<10x32x128xbf16, #tpu.memory_space<vmem>>, vector<10x1x128xbf16>
    tpu.vector_store %arg10[%c0_1, %c24, %c0_2], %2 {strides = array<i32>} : memref<10x32x128xbf16, #tpu.memory_space<vmem>>, vector<10x1x128xbf16>,
    %c0_3 = arith.constant 0 : index
    %5 = arith.index_cast %1 : i32 to index
    %c0_4 = arith.constant 0 : index
    %c0_5 = arith.constant 0 : index
    %6 = vector.load %arg2[%c0_3, %5, %c0_4, %c0_5] : memref<1x18x16x128xbf16, #tpu.memory_space<vmem>>, vector<1x10x16x128xbf16>
    %7 = vector.shape_cast %6 : vector<1x10x16x128xbf16> to vector<10x16x128xbf16>
    %8 = vector.shape_cast %7 : vector<10x16x128xbf16> to vector<160x128xbf16>
    %c0_6 = arith.constant 0 : index
    %c0_7 = arith.constant 0 : index
    %9 = vector.load %arg3[%c0_6, %c0_7] : memref<128x128xbf16, #tpu.memory_space<vmem>>, vector<128x128xbf16>
    %cst_8 = arith.constant dense<0.000000e+00> : vector<160x128xf32>
    %10 = tpu.matmul %8, %9, %cst_8 {dimension_numbers = #tpu.dot_dimension_numbers<[1], [0], [0], [1], [0, 0, 1, 1], [], []>} : vector<160x128xbf16>, vector<128x128xbf16>, vector<160x128xf32> -> vector<160x128xf32>
    %c0_9 = arith.constant 0 : index
    %c0_10 = arith.constant 0 : index
    %11 = vector.load %arg4[%c0_9, %c0_10] : memref<1x128xf32, #tpu.memory_space<vmem>>, vector<1x128xf32>
    %12 = vector.broadcast %11 : vector<1x128xf32> to vector<160x128xf32>
    %13 = arith.addf %10, %12 : vector<160x128xf32>
    %cst_11 = arith.constant 0.000000e+00 : f32
    %cst_12 = arith.constant 6.000000e+00 : f32
    %14 = vector.broadcast %cst_11 : f32 to vector<160x128xf32>
    %15 = arith.maximumf %14, %13 : vector<160x128xf32>
    %16 = vector.broadcast %cst_12 : f32 to vector<160x128xf32>
    %17 = arith.minimumf %16, %15 : vector<160x128xf32>
    %18 = arith.truncf %17 : vector<160x128xf32> to vector<160x128xbf16>
    %19 = vector.shape_cast %18 : vector<160x128xbf16> to vector<10x16x128xbf16>
    %c0_13 = arith.constant 0 : index
    %c8 = arith.constant 8 : index
    %c0_14 = arith.constant 0 : index
    %20 = vector.load %arg10[%c0_13, %c8, %c0_14] : memref<10x32x128xbf16, #tpu.memory_space<vmem>>, vector<10x16x128xbf16>
    tpu.vector_store %arg10[%c0_13, %c8, %c0_14], %19 {strides = array<i32>} : memref<10x32x128xbf16, #tpu.memory_space<vmem>>, vector<10x16x128xbf16>,
    %cst_15 = arith.constant 0.000000e+00 : bf16
    %21 = vector.broadcast %cst_15 : bf16 to vector<1x16x128xbf16>
    %c0_i32 = arith.constant 0 : i32
    %22 = arith.cmpi eq, %arg1, %c0_i32 : i32
    %23 = arith.extui %22 : i1 to i32
    %c0_i32_16 = arith.constant 0 : i32
    %24 = arith.cmpi ne, %23, %c0_i32_16 : i32
    scf.if %24 {
      %c0_44 = arith.constant 0 : index
      %c8_45 = arith.constant 8 : index
      %c0_46 = arith.constant 0 : index
      %115 = vector.load %arg10[%c0_44, %c8_45, %c0_46] : memref<10x32x128xbf16, #tpu.memory_space<vmem>>, vector<1x16x128xbf16>
      tpu.vector_store %arg10[%c0_44, %c8_45, %c0_46], %21 {strides = array<i32>} : memref<10x32x128xbf16, #tpu.memory_space<vmem>>, vector<1x16x128xbf16>,
    } else {
    }
    %c1_i32 = arith.constant 1 : i32
    %25 = arith.cmpi eq, %arg1, %c1_i32 : i32
    %26 = arith.extui %25 : i1 to i32
    %c0_i32_17 = arith.constant 0 : i32
    %27 = arith.cmpi ne, %26, %c0_i32_17 : i32
    scf.if %27 {
      %c9 = arith.constant 9 : index
      %c8_44 = arith.constant 8 : index
      %c0_45 = arith.constant 0 : index
      %115 = vector.load %arg10[%c9, %c8_44, %c0_45] : memref<10x32x128xbf16, #tpu.memory_space<vmem>>, vector<1x16x128xbf16>
      tpu.vector_store %arg10[%c9, %c8_44, %c0_45], %21 {strides = array<i32>} : memref<10x32x128xbf16, #tpu.memory_space<vmem>>, vector<1x16x128xbf16>,
    } else {
    }
    %c0_18 = arith.constant 0 : index
    %c0_19 = arith.constant 0 : index
    %28 = vector.load %arg5[%c0_18, %c0_19] : memref<9x128xf32, #tpu.memory_space<vmem>>, vector<9x128xf32>
    %c0_20 = arith.constant 0 : index
    %c0_21 = arith.constant 0 : index
    %29 = vector.load %arg6[%c0_20, %c0_21] : memref<1x128xf32, #tpu.memory_space<vmem>>, vector<1x128xf32>
    %30 = vector.shape_cast %29 : vector<1x128xf32> to vector<1x1x128xf32>
    %c0_22 = arith.constant 0 : index
    %c0_23 = arith.constant 0 : index
    %c0_24 = arith.constant 0 : index
    %31 = vector.load %arg10[%c0_22, %c0_23, %c0_24] : memref<10x32x128xbf16, #tpu.memory_space<vmem>>, vector<8x32x128xbf16>
    %32 = arith.extf %31 : vector<8x32x128xbf16> to vector<8x32x128xf32>
    %33 = vector.extract_strided_slice %28 {offsets = [0, 0], sizes = [1, 128], strides = [1, 1]} : vector<9x128xf32> to vector<1x128xf32>
    %34 = vector.shape_cast %33 : vector<1x128xf32> to vector<1x1x128xf32>
    %35 = vector.extract_strided_slice %32 {offsets = [0, 7, 0], sizes = [8, 16, 128], strides = [1, 1, 1]} : vector<8x32x128xf32> to vector<8x16x128xf32>
    %36 = vector.broadcast %34 : vector<1x1x128xf32> to vector<8x16x128xf32>
    %37 = arith.mulf %35, %36 : vector<8x16x128xf32>
    %38 = vector.extract_strided_slice %28 {offsets = [1, 0], sizes = [1, 128], strides = [1, 1]} : vector<9x128xf32> to vector<1x128xf32>
    %39 = vector.shape_cast %38 : vector<1x128xf32> to vector<1x1x128xf32>
    %40 = vector.extract_strided_slice %32 {offsets = [0, 8, 0], sizes = [8, 16, 128], strides = [1, 1, 1]} : vector<8x32x128xf32> to vector<8x16x128xf32>
    %41 = vector.broadcast %39 : vector<1x1x128xf32> to vector<8x16x128xf32>
    %42 = arith.mulf %40, %41 : vector<8x16x128xf32>
    %43 = arith.addf %37, %42 : vector<8x16x128xf32>
    %44 = vector.extract_strided_slice %28 {offsets = [2, 0], sizes = [1, 128], strides = [1, 1]} : vector<9x128xf32> to vector<1x128xf32>
    %45 = vector.shape_cast %44 : vector<1x128xf32> to vector<1x1x128xf32>
    %46 = vector.extract_strided_slice %32 {offsets = [0, 9, 0], sizes = [8, 16, 128], strides = [1, 1, 1]} : vector<8x32x128xf32> to vector<8x16x128xf32>
    %47 = vector.broadcast %45 : vector<1x1x128xf32> to vector<8x16x128xf32>
    %48 = arith.mulf %46, %47 : vector<8x16x128xf32>
    %49 = arith.addf %43, %48 : vector<8x16x128xf32>
    %50 = vector.broadcast %30 : vector<1x1x128xf32> to vector<8x16x128xf32>
    %51 = arith.addf %49, %50 : vector<8x16x128xf32>
    %c1 = arith.constant 1 : index
    %c0_25 = arith.constant 0 : index
    %c0_26 = arith.constant 0 : index
    %52 = vector.load %arg10[%c1, %c0_25, %c0_26] : memref<10x32x128xbf16, #tpu.memory_space<vmem>>, vector<8x32x128xbf16>
    %53 = arith.extf %52 : vector<8x32x128xbf16> to vector<8x32x128xf32>
    %54 = vector.extract_strided_slice %28 {offsets = [3, 0], sizes = [1, 128], strides = [1, 1]} : vector<9x128xf32> to vector<1x128xf32>
    %55 = vector.shape_cast %54 : vector<1x128xf32> to vector<1x1x128xf32>
    %56 = vector.extract_strided_slice %53 {offsets = [0, 7, 0], sizes = [8, 16, 128], strides = [1, 1, 1]} : vector<8x32x128xf32> to vector<8x16x128xf32>
    %57 = vector.broadcast %55 : vector<1x1x128xf32> to vector<8x16x128xf32>
    %58 = arith.mulf %56, %57 : vector<8x16x128xf32>
    %59 = vector.extract_strided_slice %28 {offsets = [4, 0], sizes = [1, 128], strides = [1, 1]} : vector<9x128xf32> to vector<1x128xf32>
    %60 = vector.shape_cast %59 : vector<1x128xf32> to vector<1x1x128xf32>
    %61 = vector.extract_strided_slice %53 {offsets = [0, 8, 0], sizes = [8, 16, 128], strides = [1, 1, 1]} : vector<8x32x128xf32> to vector<8x16x128xf32>
    %62 = vector.broadcast %60 : vector<1x1x128xf32> to vector<8x16x128xf32>
    %63 = arith.mulf %61, %62 : vector<8x16x128xf32>
    %64 = arith.addf %58, %63 : vector<8x16x128xf32>
    %65 = vector.extract_strided_slice %28 {offsets = [5, 0], sizes = [1, 128], strides = [1, 1]} : vector<9x128xf32> to vector<1x128xf32>
    %66 = vector.shape_cast %65 : vector<1x128xf32> to vector<1x1x128xf32>
    %67 = vector.extract_strided_slice %53 {offsets = [0, 9, 0], sizes = [8, 16, 128], strides = [1, 1, 1]} : vector<8x32x128xf32> to vector<8x16x128xf32>
    %68 = vector.broadcast %66 : vector<1x1x128xf32> to vector<8x16x128xf32>
    %69 = arith.mulf %67, %68 : vector<8x16x128xf32>
    %70 = arith.addf %64, %69 : vector<8x16x128xf32>
    %71 = arith.addf %51, %70 : vector<8x16x128xf32>
    %c2 = arith.constant 2 : index
    %c0_27 = arith.constant 0 : index
    %c0_28 = arith.constant 0 : index
    %72 = vector.load %arg10[%c2, %c0_27, %c0_28] : memref<10x32x128xbf16, #tpu.memory_space<vmem>>, vector<8x32x128xbf16>
    %73 = arith.extf %72 : vector<8x32x128xbf16> to vector<8x32x128xf32>
    %74 = vector.extract_strided_slice %28 {offsets = [6, 0], sizes = [1, 128], strides = [1, 1]} : vector<9x128xf32> to vector<1x128xf32>
    %75 = vector.shape_cast %74 : vector<1x128xf32> to vector<1x1x128xf32>
    %76 = vector.extract_strided_slice %73 {offsets = [0, 7, 0], sizes = [8, 16, 128], strides = [1, 1, 1]} : vector<8x32x128xf32> to vector<8x16x128xf32>
    %77 = vector.broadcast %75 : vector<1x1x128xf32> to vector<8x16x128xf32>
    %78 = arith.mulf %76, %77 : vector<8x16x128xf32>
    %79 = vector.extract_strided_slice %28 {offsets = [7, 0], sizes = [1, 128], strides = [1, 1]} : vector<9x128xf32> to vector<1x128xf32>
    %80 = vector.shape_cast %79 : vector<1x128xf32> to vector<1x1x128xf32>
    %81 = vector.extract_strided_slice %73 {offsets = [0, 8, 0], sizes = [8, 16, 128], strides = [1, 1, 1]} : vector<8x32x128xf32> to vector<8x16x128xf32>
    %82 = vector.broadcast %80 : vector<1x1x128xf32> to vector<8x16x128xf32>
    %83 = arith.mulf %81, %82 : vector<8x16x128xf32>
    %84 = arith.addf %78, %83 : vector<8x16x128xf32>
    %85 = vector.extract_strided_slice %28 {offsets = [8, 0], sizes = [1, 128], strides = [1, 1]} : vector<9x128xf32> to vector<1x128xf32>
    %86 = vector.shape_cast %85 : vector<1x128xf32> to vector<1x1x128xf32>
    %87 = vector.extract_strided_slice %73 {offsets = [0, 9, 0], sizes = [8, 16, 128], strides = [1, 1, 1]} : vector<8x32x128xf32> to vector<8x16x128xf32>
    %88 = vector.broadcast %86 : vector<1x1x128xf32> to vector<8x16x128xf32>
    %89 = arith.mulf %87, %88 : vector<8x16x128xf32>
    %90 = arith.addf %84, %89 : vector<8x16x128xf32>
    %91 = arith.addf %71, %90 : vector<8x16x128xf32>
    %cst_29 = arith.constant 0.000000e+00 : f32
    %cst_30 = arith.constant 6.000000e+00 : f32
    %92 = vector.broadcast %cst_29 : f32 to vector<8x16x128xf32>
    %93 = arith.maximumf %92, %91 : vector<8x16x128xf32>
    %94 = vector.broadcast %cst_30 : f32 to vector<8x16x128xf32>
    %95 = arith.minimumf %94, %93 : vector<8x16x128xf32>
    %96 = vector.shape_cast %95 : vector<8x16x128xf32> to vector<128x128xf32>
    %97 = arith.truncf %96 : vector<128x128xf32> to vector<128x128xbf16>
    %c0_31 = arith.constant 0 : index
    %c0_32 = arith.constant 0 : index
    %98 = vector.load %arg7[%c0_31, %c0_32] : memref<128x128xbf16, #tpu.memory_space<vmem>>, vector<128x128xbf16>
    %cst_33 = arith.constant dense<0.000000e+00> : vector<128x128xf32>
    %99 = tpu.matmul %97, %98, %cst_33 {dimension_numbers = #tpu.dot_dimension_numbers<[1], [0], [0], [1], [0, 0, 1, 1], [], []>} : vector<128x128xbf16>, vector<128x128xbf16>, vector<128x128xf32> -> vector<128x128xf32>
    %c0_34 = arith.constant 0 : index
    %c0_35 = arith.constant 0 : index
    %100 = vector.load %arg8[%c0_34, %c0_35] : memref<1x128xf32, #tpu.memory_space<vmem>>, vector<1x128xf32>
    %101 = vector.broadcast %100 : vector<1x128xf32> to vector<128x128xf32>
    %102 = arith.addf %99, %101 : vector<128x128xf32>
    %c1_i32_36 = arith.constant 1 : i32
    %103 = arith.addi %1, %c1_i32_36 : i32
    %c0_37 = arith.constant 0 : index
    %104 = arith.index_cast %103 : i32 to index
    %c0_38 = arith.constant 0 : index
    %c0_39 = arith.constant 0 : index
    %105 = vector.load %arg2[%c0_37, %104, %c0_38, %c0_39] : memref<1x18x16x128xbf16, #tpu.memory_space<vmem>>, vector<1x8x16x128xbf16>
    %106 = vector.shape_cast %105 : vector<1x8x16x128xbf16> to vector<8x16x128xbf16>
    %107 = vector.shape_cast %106 : vector<8x16x128xbf16> to vector<128x128xbf16>
    %108 = arith.extf %107 : vector<128x128xbf16> to vector<128x128xf32>
    %109 = arith.addf %102, %108 : vector<128x128xf32>
    %110 = vector.shape_cast %109 : vector<128x128xf32> to vector<8x16x128xf32>
    %111 = arith.truncf %110 : vector<8x16x128xf32> to vector<8x16x128xbf16>
    %c0_40 = arith.constant 0 : index
    %c0_41 = arith.constant 0 : index
    %c0_42 = arith.constant 0 : index
    %c0_43 = arith.constant 0 : index
    %112 = vector.load %arg9[%c0_40, %c0_41, %c0_42, %c0_43] : memref<1x8x16x128xbf16, #tpu.memory_space<vmem>>, vector<1x8x16x128xbf16>
    %113 = vector.shape_cast %112 : vector<1x8x16x128xbf16> to vector<8x16x128xbf16>
    %114 = vector.shape_cast %111 : vector<8x16x128xbf16> to vector<1x8x16x128xbf16>
    tpu.vector_store %arg9[%c0_40, %c0_41, %c0_42, %c0_43], %114 {strides = array<i32>} : memref<1x8x16x128xbf16, #tpu.memory_space<vmem>>, vector<1x8x16x128xbf16>,
    return
  }
  func.func @transform_0(%arg0: i32, %arg1: i32) -> (i32, i32, i32, i32) {
    %c0_i32 = arith.constant 0 : i32
    %c0_i32_0 = arith.constant 0 : i32
    %c0_i32_1 = arith.constant 0 : i32
    %c0_i32_2 = arith.constant 0 : i32
    return %arg0, %c0_i32, %c0_i32_0, %c0_i32_1 : i32, i32, i32, i32
  }
  func.func @transform_1(%arg0: i32, %arg1: i32) -> (i32, i32) {
    %c0_i32 = arith.constant 0 : i32
    %c0_i32_0 = arith.constant 0 : i32
    %c0_i32_1 = arith.constant 0 : i32
    return %c0_i32, %c0_i32_0 : i32, i32
  }
  func.func @transform_2(%arg0: i32, %arg1: i32) -> (i32, i32) {
    %c0_i32 = arith.constant 0 : i32
    %c0_i32_0 = arith.constant 0 : i32
    %c0_i32_1 = arith.constant 0 : i32
    return %c0_i32, %c0_i32_0 : i32, i32
  }
  func.func @transform_3(%arg0: i32, %arg1: i32) -> (i32, i32) {
    %c0_i32 = arith.constant 0 : i32
    %c0_i32_0 = arith.constant 0 : i32
    %c0_i32_1 = arith.constant 0 : i32
    return %c0_i32, %c0_i32_0 : i32, i32
  }
  func.func @transform_4(%arg0: i32, %arg1: i32) -> (i32, i32) {
    %c0_i32 = arith.constant 0 : i32
    %c0_i32_0 = arith.constant 0 : i32
    %c0_i32_1 = arith.constant 0 : i32
    return %c0_i32, %c0_i32_0 : i32, i32
  }
  func.func @transform_5(%arg0: i32, %arg1: i32) -> (i32, i32) {
    %c0_i32 = arith.constant 0 : i32
    %c0_i32_0 = arith.constant 0 : i32
    %c0_i32_1 = arith.constant 0 : i32
    return %c0_i32, %c0_i32_0 : i32, i32
  }
  func.func @transform_6(%arg0: i32, %arg1: i32) -> (i32, i32) {
    %c0_i32 = arith.constant 0 : i32
    %c0_i32_0 = arith.constant 0 : i32
    %c0_i32_1 = arith.constant 0 : i32
    return %c0_i32, %c0_i32_0 : i32, i32
  }
  func.func @transform_7(%arg0: i32, %arg1: i32) -> (i32, i32, i32, i32) {
    %c0_i32 = arith.constant 0 : i32
    %c0_i32_0 = arith.constant 0 : i32
    %c0_i32_1 = arith.constant 0 : i32
    return %arg0, %arg1, %c0_i32, %c0_i32_0 : i32, i32, i32, i32
  }
}

</mosaic_0001>

<bundles_post_ra>
// kernel: tpu_custom_call.1
= control target key start
LH: loop header
LB: loop body
LE: loop exit
PB: predicated region body
PF: predicated region fallthrough
CT: control target
= control target key end

     0   :  { %s4286_s0 = inlined_call_operand.hbm [shape: bf16[2,18,16,128], index: 0, kind: input, shape index: {}]   ;;  %s4287_s1 = inlined_call_operand.hbm [shape: bf16[128,128], index: 1, kind: input, shape index: {}]   ;;  %s4288_s2 = inlined_call_operand.vmem [shape: f32[1,128], index: 2, kind: input, shape index: {}]   ;;  %s4289_s3 = inlined_call_operand.hbm [shape: f32[9,128], index: 3, kind: input, shape index: {}]   ;;  %s4290_s4 = inlined_call_operand.vmem [shape: f32[1,128], index: 4, kind: input, shape index: {}]   ;;  %s4291_s5 = inlined_call_operand.hbm [shape: bf16[128,128], index: 5, kind: input, shape index: {}]   ;;  %s4292_s6 = inlined_call_operand.vmem [shape: f32[1,128], index: 6, kind: input, shape index: {}]   ;;  %s4293_s7 = inlined_call_operand.hbm [shape: bf16[2,16,16,128], index: 7, kind: output, shape index: {}]  }
   0x1   :  { %4311 = sst [smem:[#allocation22_spill]] %s4287_s1 }
   0x2   :  { %4312 = sst [smem:[#allocation23_spill]] %s4289_s3 }
   0x3   :  { %4313 = sst [smem:[#allocation24_spill]] %s4290_s4 }
   0x4   :  { %4314 = sst [smem:[#allocation25_spill]] %s4291_s5 }
   0x5   :  { %4315 = sst [smem:[#allocation26_spill]] %s4292_s6 }
   0x6   :  { %4316 = sst [smem:[#allocation27_spill]] %s4293_s7 }
   0x7   :  { %12 = vsyncpa [#allocation4], 0 }
   0x8   :  { %14 = vsyncpa [#allocation4 + $0x1], 0 }
   0x9   :  { %15 = vsyncpa [#allocation7], 0 }
   0xa   :  { %16 = vsyncpa [#allocation10], 0 }
   0xb   :  { %17 = vsyncpa [#allocation5], 0 }
   0xc   :  { %19 = vsyncpa [#allocation5 + $0x1], 0  ;;  %s3206_s24 = smov 0   ;;  %s3208_s25 = smov 0  }
   0xd   :  { %s3210_s26 = smov 0   ;;  %s3212_s27 = smov 0  }
   0xe   :  { %s3214_s28 = smov 0   ;;  %s3216_s29 = smov 0  }
   0xf   :  { %s3218_s30 = smov 0   ;;  %s3220_s8 = smov 0  }
  0x10   :  { %s3222_s9 = smov 0   ;;  %s3224_s10 = smov 0  }
  0x11   :  { %s3226_s11 = smov 0  }
  0x12 LB: > { %4317 = sst [smem:[#allocation16_spill]] %s3111_s24  ;;  %s2437_s12 = sadd.s32 4294967295, %s3151_s11   ;;  %s3151_s11 = sphi %s3226_s11, %s25_s11   ;;  %s3147_s10 = sphi %s3224_s10, %s4366_s10   ;;  %s3143_s9 = sphi %s3222_s9, %s4365_s9   ;;  %s3139_s8 = sphi %s3220_s8, %s4364_s8   ;;  %s3135_s30 = sphi %s3218_s30, %s4363_s30   ;;  %s3131_s29 = sphi %s3216_s29, %s4362_s29   ;;  %s3127_s28 = sphi %s3214_s28, %s4361_s28   ;;  %s3123_s27 = sphi %s3212_s27, %s4360_s27   ;;  %s3119_s26 = sphi %s3210_s26, %s4359_s26   ;;  %s3115_s25 = sphi %s3208_s25, %s4358_s25   ;;  %s3111_s24 = sphi %s3206_s24, %s4357_s24  }
  0x13   : > { %4318 = sst [smem:[#allocation17_spill]] %s3139_s8  ;;  %s2438_s13 = sadd.s32 4294967294, %s3151_s11  }
  0x14   : > { %p57_p0 = scmp.ne.s32.totalorder %s3127_s28, %s3123_s27  ;;  %p3262_p1 = scmp.eq.s32.totalorder %s2437_s12, 0 }
  0x15   : > { %p208_p2 = scmp.ne.s32.totalorder %s3119_s26, %s3115_s25  ;;  %p209_p4 = scmp.eq.s32.totalorder %s2437_s12, 3 }
  0x16   : > { %s4319_s14 = scalar_select %p3262_p1, 1, 0 }
  0x17   : > { %p3271_p3 = por %p3262_p1, %p57_p0  ;;  %p214_p5 = scmp.ne.s32.totalorder %s3115_s25, %s3111_s24 }
  0x18   : > { %p215_p6 = scmp.eq.s32.totalorder %s2438_s13, 3  ;;  %p3277_p7 = por %p209_p4, %p208_p2 }
  0x19   : > { %s4320_s16 = scalar_select %p3271_p3, 1, 0 }
  0x1a   : > { %s4321_s17 = scalar_select %p3277_p7, 1, 0 }
  0x1b   : > { %p2439_p8 = scmp.ge.s32.totalorder %s3151_s11, 1  ;;  %p3282_p9 = por %p215_p6, %p214_p5 }
  0x1c   : > { %4322 = sst [smem:[#allocation18_spill]] %s4321_s17  ;;  %p222_p10 = scmp.lt.s32.totalorder %s3151_s11, 5 }
  0x1d   : > { %s4323_s18 = scalar_select %p3282_p9, 1, 0 }
  0x1e   : > { %p3287_p11 = pnand %p2439_p8, %p222_p10  ;;  %s3153_s20 = smov [#allocation6]  }
  0x1f   : > { %4324 = sst [smem:[#allocation19_spill]] %s4323_s18  ;;  %s234_s21 = sshll.u32 %s3153_s20, 4  ;;  %s235_s21 = int_to_ptr.vmem [resolvable:$true] %s234_s21 }
  0x20   : > { %s4325_s19 = scalar_select %p3287_p11, 1, 0 }
  0x21   : > { %p2754_p12 = pneg %p3287_p11  ;;  %s3154_s23 = smov [#allocation8]  }
  0x22   : > { %s250_s27 = sshll.u32 %s3154_s23, 4  ;;  %s4327_s1 = sld [smem:[#allocation22_spill]]  ;;  %s3299_s27 = int_to_ptr.vmem [resolvable:$true] %s250_s27 }
  0x23   : > { %p3295_p13 = pnand %p2754_p12, %p3262_p1 }
  0x25   : > { %p3309_p2 = pneg %p3295_p13 }
  0x28   : > { %s2907_s15 = scalar_lea.hbm %s4327_s1, 1024 }
  0x29   : > { %p2908_p0 = scmp.ne.s32.totalorder %s4327_s1, %s2907_s15  ;;  %p2914_p6 = scmp.lt.u32.totalorder %s2907_s15, %s4327_s1 }
  0x2b   : > { %p2910_p4 = pnand %p3309_p2, %p2908_p0 }
  0x2d   : > { %p2911_p5 = pneg %p2910_p4 }
  0x2f   : > { %p2916_p8 = pnand %p2914_p6, %p2911_p5 }
  0x31   : > { %2919 = shalt.err (!%p2916_p8)
}
  0x32   : > { %s2920_s12 = scalar_lea.vmem %s235_s21, 1024  ;;  %p2928_p7 = scmp.lt.s32.totalorder %s235_s21, %s235_s21 }
  0x33   : > { %p2921_p10 = scmp.ne.s32.totalorder %s235_s21, %s2920_s12  ;;  %p2929_p1 = scmp.lt.s32.totalorder %s2920_s12, %s2920_s12 }
  0x35   : > { %p2923_p12 = pnand %p2921_p10, %p3309_p2  ;;  %p2930_p3 = por %p2929_p1, %p2928_p7 }
  0x37   : > { %p2924_p9 = pneg %p2923_p12 }
  0x39   : > { %p2931_p11 = pnand %p2930_p3, %p2924_p9 }
  0x3b   : > { %2934 = shalt.err (!%p2931_p11)
}
  0x3c   : > { %s4305_s24 = smov 64   ;;  %s4307_s18 = smov 4  }
  0x3d   : > { %2757 = dma.hbm_to_vmem [thread:$0]  (!%p3295_p13), %s4327_s1, 1024, %s235_s21, [#allocation7], %s4305_s24, %s4305_s24, %s4307_s18  }
  0x3e   : > { %s4329_s3 = sld [smem:[#allocation23_spill]] }
  0x44   : > { %s2935_s17 = scalar_lea.hbm %s4329_s3, 256 }
  0x45   : > { %p2936_p1 = scmp.ne.s32.totalorder %s4329_s3, %s2935_s17  ;;  %p2942_p9 = scmp.lt.u32.totalorder %s2935_s17, %s4329_s3 }
  0x47   : > { %p2938_p3 = pnand %p2936_p1, %p3309_p2 }
  0x49   : > { %p2939_p7 = pneg %p2938_p3 }
  0x4b   : > { %p2944_p11 = pnand %p2942_p9, %p2939_p7 }
  0x4d   : > { %2947 = shalt.err (!%p2944_p11)
}
  0x4e   : > { %s2948_s21 = scalar_lea.vmem %s3299_s27, 256  ;;  %p2956_p6 = scmp.lt.s32.totalorder %s3299_s27, %s3299_s27 }
  0x4f   : > { %p2949_p0 = scmp.ne.s32.totalorder %s3299_s27, %s2948_s21  ;;  %p2957_p8 = scmp.lt.s32.totalorder %s2948_s21, %s2948_s21 }
  0x51   : > { %p2951_p4 = pnand %p2949_p0, %p3309_p2  ;;  %p2958_p10 = por %p2957_p8, %p2956_p6 }
  0x53   : > { %p2952_p5 = pneg %p2951_p4 }
  0x55   : > { %p2959_p12 = pnand %p2958_p10, %p2952_p5 }
  0x57   : > { %2962 = shalt.err (!%p2959_p12)
}
  0x58   : > { %s3157_s8 = smov 128   ;;  %s3158_s4 = smov 8  }
  0x59   : > { %2760 = dma.hbm_to_vmem [thread:$0]  (!%p3295_p13), %s4329_s3, 256, %s3299_s27, [#allocation7], %s3157_s8, %s3157_s8, %s3158_s4  }
  0x5a   : > { %s3159_s7 = smov [#allocation9]   ;;  %s4330_s5 = sld [smem:[#allocation25_spill]] }
  0x5b   : > { %s266_s15 = sshll.u32 %s3159_s7, 4  ;;  %s267_s15 = int_to_ptr.vmem [resolvable:$true] %s266_s15 }
  0x60   : > { %s2963_s12 = scalar_lea.hbm %s4330_s5, 1024 }
  0x61   : > { %p2964_p1 = scmp.ne.s32.totalorder %s4330_s5, %s2963_s12  ;;  %p2970_p9 = scmp.lt.u32.totalorder %s2963_s12, %s4330_s5 }
  0x63   : > { %p2966_p3 = pnand %p2964_p1, %p3309_p2 }
  0x65   : > { %p2967_p7 = pneg %p2966_p3 }
  0x67   : > { %p2972_p11 = pnand %p2970_p9, %p2967_p7 }
  0x69   : > { %2975 = shalt.err (!%p2972_p11)
}
  0x6a   : > { %s2976_s27 = scalar_lea.vmem %s267_s15, 1024  ;;  %p2984_p6 = scmp.lt.s32.totalorder %s267_s15, %s267_s15 }
  0x6b   : > { %p2977_p0 = scmp.ne.s32.totalorder %s267_s15, %s2976_s27  ;;  %p2985_p8 = scmp.lt.s32.totalorder %s2976_s27, %s2976_s27 }
  0x6d   : > { %p2979_p4 = pnand %p2977_p0, %p3309_p2  ;;  %p2986_p10 = por %p2985_p8, %p2984_p6 }
  0x6f   : > { %p2980_p5 = pneg %p2979_p4 }
  0x71   : > { %p2987_p12 = pnand %p2986_p10, %p2980_p5 }
  0x73   : > { %2990 = shalt.err (!%p2987_p12)
}
  0x74   : > { %s4331_s24 = smov 4   ;;  %s4332_s8 = smov 64  }
  0x75   : > { %2763 = dma.hbm_to_vmem [thread:$0]  (!%p3295_p13), %s4330_s5, 1024, %s267_s15, [#allocation10], %s4332_s8, %s4332_s8, %s4331_s24  }
  0x76   : > { %s34_s20 = sadd.s32 1, %s3143_s9  ;;  %s37_s22 = sadd.s32 1, %s3147_s10 }
  0x77   : > { %p35_p2 = scmp.ge.s32.totalorder %s34_s20, 2  ;;  %s44_s4 = sadd.s32 1, %s3131_s29 }
  0x78   : > { %p51_p1 = scmp.ne.s32.totalorder %s3131_s29, %s3127_s28  ;;  %p52_p3 = scmp.eq.s32.totalorder %s3151_s11, 0 }
  0x79   : > { %s4368_s20 = smov (%p35_p2, %s34_s20), 0  ;;  %s4370_s22 = smov (!%p35_p2, %s37_s22), %s3147_s10 }
  0x7a   : > { %4333 = sst [smem:[#allocation20_spill]] %s4368_s20  ;;  %s194_s6 = ssub.s32 %s3143_s9, %s4368_s20 }
  0x7b   : > { %p39_p7 = scmp.ge.s32.totalorder %s4370_s22, 2  ;;  %p2775_p9 = scmp.lt.s32.totalorder %s3151_s11, 4 }
  0x7c   : > { %p3384_p13 = por %p52_p3, %p51_p1  ;;  %s283_s7 = sand.u32 1, %s3131_s29  }
  0x7d   : > { %s4372_s22 = smov (%p39_p7, %s4370_s22), 0  ;;  %s2735_s15 = smul.u32 144, %s283_s7 }
  0x7e   : > { %4335 = sst [smem:[#allocation21_spill]] %s4372_s22  ;;  %s41_s13 = ssub.s32 %s3147_s10, %s4372_s22 }
  0x7f   : > { %s2736_s23 = smul.u32 2304, %s3147_s10  ;;  %p42_p11 = scmp.eq.s32.totalorder %s41_s13, 0 }
  0x80   : > { %s195_s12 = sor.u32 %s194_s6, %s41_s13  ;;  %s4336_s27 = sadd.s32 1, %s3119_s26 }
  0x81   : > { %p196_p0 = scmp.eq.s32.totalorder %s195_s12, 0  ;;  %s3405_s5 = scalar_lea.hbm %s4286_s0, %s2736_s23 }
  0x82   : > { %s3395_s21 = scalar_select %p42_p11, %s3131_s29, %s44_s4  }
  0x83   : > { %s3400_s1 = scalar_select %p196_p0, %s3119_s26, %s4336_s27  }
  0x84   : > { %s287_s20 = scalar_lea.vmem [#allocation3], %s2735_s15  ;;  %p3413_p4 = pnand %p2775_p9, %p3384_p13 }
  0x85   : > { %s294_s22 = sshll.u32 %s287_s20, 4  ;;  %s3417_s6 = scalar_lea.sflag [#allocation4], %s283_s7  ;;  %s3407_s22 = int_to_ptr.vmem [resolvable:$true] %s294_s22 }
  0x86   : > { %s2991_s3 = scalar_lea.hbm %s3405_s5, 2304  ;;  %p2993_p6 = pneg %p3413_p4 }
  0x87   : > { %p2992_p5 = scmp.ne.s32.totalorder %s3405_s5, %s2991_s3  ;;  %s2996_s17 = scalar_lea.hbm %s4286_s0, 4608 }
  0x88   : > { %p2997_p12 = scmp.lt.u32.totalorder %s3405_s5, %s4286_s0  ;;  %p2998_p2 = scmp.lt.u32.totalorder %s2996_s17, %s2991_s3 }
  0x89   : > { %p2994_p8 = pnand %p2993_p6, %p2992_p5  ;;  %p3000_p3 = scmp.lt.u32.totalorder %s2991_s3, %s3405_s5 }
  0x8a   : > { %p2999_p1 = por %p2998_p2, %p2997_p12 }
  0x8b   : > { %p2995_p10 = pneg %p2994_p8 }
  0x8c   : > { %p3001_p7 = por %p3000_p3, %p2999_p1 }
  0x8e   : > { %p3002_p9 = pnand %p3001_p7, %p2995_p10 }
  0x90   : > { %3005 = shalt.err (!%p3002_p9)
}
  0x91   : > { %s3006_s7 = scalar_lea.vmem %s3407_s22, 2304  ;;  %s3160_s12 = smov [#allocation3]  }
  0x92   : > { %p3007_p13 = scmp.ne.s32.totalorder %s3407_s22, %s3006_s7  ;;  %s3011_s27 = sshll.u32 %s3160_s12, 4  ;;  %s3012_s27 = int_to_ptr.vmem [resolvable:$false] %s3011_s27 }
  0x93   : > { %s3013_s18 = scalar_lea.vmem %s3012_s27, 4608  ;;  %p3014_p5 = scmp.lt.s32.totalorder %s3407_s22, %s3012_s27 }
  0x94   : > { %p3009_p11 = pnand %p3007_p13, %p2993_p6  ;;  %p3015_p8 = scmp.lt.s32.totalorder %s3013_s18, %s3006_s7 }
  0x96   : > { %p3010_p0 = pneg %p3009_p11  ;;  %p3016_p12 = por %p3015_p8, %p3014_p5 }
  0x98   : > { %p3017_p2 = pnand %p3016_p12, %p3010_p0 }
  0x9a   : > { %3020 = shalt.err (!%p3017_p2)
}
  0x9b   : > { %2767 = dma.hbm_to_vmem [thread:$0]  (!%p3413_p4), %s3405_s5, 2304, %s3407_s22, %s3417_s6, %s4332_s8, %s4332_s8, %s4331_s24  }
  0x9c   : > { %p4338_p6 = scmp.ne.s32.totalorder %s4325_s19, 0 }
  0x9d   : > { %s308_s3 = sand.u32 (!%p4338_p6), 1, %s3127_s28   ;;  %p4339_p10 = scmp.ne.s32.totalorder (!%p4338_p6), %s4320_s16, 0 }
  0x9e   : > { %306 = sbr.rel (%p4338_p6) target bundleno = 914 (0x392), region = 48  ;;  %s309_s15 = scalar_lea.sflag (!%p4338_p6), [#allocation4], %s308_s3 }
  0x9f   : > { %s3451_s20 = smul.u32 (!%p4338_p6), 144, %s308_s3 }
  0xa1   : > { %s312_s17 = scalar_lea.vmem (!%p4338_p6), [#allocation3], %s3451_s20 }
  0xa5   : > { %3094 = dma.done.wait (%p4339_p10), %s309_s15, 2304  }
  0xa6   : > { %3096 = vsyncadd (%p4339_p10), %s309_s15, 4294964992  ;;  %p4340_p1 = scmp.ne.s32.totalorder %s4319_s14, 0 }
  0xa8   : > { %3098 = dma.done.wait (%p4340_p1), [#allocation7], 1280  }
  0xa9   : > { %3100 = vsyncadd (%p4340_p1), [#allocation7], 4294966016 }
  0xaa   : > { %3102 = dma.done.wait (%p4340_p1), [#allocation10], 1024  }
  0xab   : > { %3104 = vsyncadd (%p4340_p1), [#allocation10], 4294966272  ;;  %s352_s5 = sand.u32 1, %s3115_s25   ;;  %vm358_vm0 = vcmask 1043459   ;;  %vm359_vm1 = vsmask.f32 7950 }
  0xac   : > { %s3469_s16 = sshll.u32 %s352_s5, 6  ;;  %vm3471_vm2 = vmand %vm358_vm0, %vm359_vm1  ;;  %vm391_vm3 = vcmask 1044484   ;;  %vm392_vm4 = vsmask.f32 4352  ;;  %v361_v1 = vld [vmem:[#allocation2] sm:$0x8] }
  0xad   : > { %v364_v2 = vld [vmem:[#allocation2 + $0x10] sm:$0x8]  ;;  %v367_v3 = vld [vmem:[#allocation2 + $0x20] sm:$0x8]  ;;  %v362_v4 = vsel %vm3471_vm2, 0, %v361_v1  ;;  %v2880_v12 = vld [vmem:[#allocation6 + $0x8] sm:$0xff]  }
  0xae   : > { %v365_v5 = vsel %vm3471_vm2, 0, %v364_v2  ;;  %v368_v6 = vsel %vm3471_vm2, 0, %v367_v3  ;;  %v370_v7 = vld [vmem:[#allocation2 + $0x30] sm:$0x8]  ;;  %v2879_v8 = vld [vmem:[#allocation6] sm:$0xff]   ;;  %vm3489_vm5 = vmand %vm391_vm3, %vm392_vm4  ;;  %s2527_s14 = sshll.u32 %s3135_s30, 6 }
  0xaf   : > { %363 = vst [vmem:[#allocation2] sm:$0x8] %v362_v4  ;;  %366 = vst [vmem:[#allocation2 + $0x10] sm:$0x8] %v365_v5  ;;  %v371_v9 = vsel %vm3471_vm2, 0, %v370_v7  ;;  %2667 = vmatprep.subr.bf16.mxu0 %v2879_v8  ;;  %v2881_v44 = vld [vmem:[#allocation6 + $0x10] sm:$0xff]   ;;  %s3524_s19 = scalar_lea.vmem %s312_s17, %s2527_s14 [#allocation3] }
  0xb0   : > { %369 = vst [vmem:[#allocation2 + $0x20] sm:$0x8] %v368_v6  ;;  %v373_v10 = vld [vmem:[#allocation2 + $0x40] sm:$0x8]  ;;  %v376_v11 = vld [vmem:[#allocation2 + $0x50] sm:$0x8]  ;;  %2668 = vmatpush3.bf16.msra.mxu0 %v2879_v8 }
  0xb1   : > { %372 = vst [vmem:[#allocation2 + $0x30] sm:$0x8] %v371_v9  ;;  %v374_v13 = vsel %vm3471_vm2, 0, %v373_v10  ;;  %v377_v14 = vsel %vm3471_vm2, 0, %v376_v11  ;;  %v379_v15 = vld [vmem:[#allocation2 + $0x60] sm:$0x8]  ;;  %2669 = vmatprep.subr.bf16.mxu0 %v2880_v12 }
  0xb2   : > { %v382_v16 = vld [vmem:[#allocation2 + $0x70] sm:$0x8]  ;;  %375 = vst [vmem:[#allocation2 + $0x40] sm:$0x8] %v374_v13  ;;  %378 = vst [vmem:[#allocation2 + $0x50] sm:$0x8] %v377_v14 }
  0xb3   : > { %v380_v18 = vsel %vm3471_vm2, 0, %v379_v15  ;;  %v383_v19 = vsel %vm3471_vm2, 0, %v382_v16  ;;  %v385_v20 = vld [vmem:[#allocation2 + $0x80] sm:$0x8]  ;;  %v388_v21 = vld [vmem:[#allocation2 + $0x90] sm:$0x8] }
  0xb4   : > { %381 = vst [vmem:[#allocation2 + $0x60] sm:$0x8] %v380_v18  ;;  %384 = vst [vmem:[#allocation2 + $0x70] sm:$0x8] %v383_v19  ;;  %v386_v22 = vsel %vm3471_vm2, 0, %v385_v20  ;;  %v389_v23 = vsel %vm3471_vm2, 0, %v388_v21  ;;  %2670 = vmatpush3.bf16.msra.mxu0 %v2880_v12 }
  0xb5   : > { %v394_v24 = vld [vmem:[#allocation2 + $0x8] sm:$0x10]  ;;  %v397_v25 = vld [vmem:[#allocation2 + $0x18] sm:$0x10]  ;;  %387 = vst [vmem:[#allocation2 + $0x80] sm:$0x8] %v386_v22  ;;  %2671 = vmatprep.subr.bf16.mxu0 %v2881_v44 }
  0xb6   : > { %390 = vst [vmem:[#allocation2 + $0x90] sm:$0x8] %v389_v23  ;;  %v395_v26 = vsel %vm3489_vm5, 0, %v394_v24  ;;  %v398_v27 = vsel %vm3489_vm5, 0, %v397_v25  ;;  %v400_v28 = vld [vmem:[#allocation2 + $0x28] sm:$0x10] }
  0xb7   : > { %v403_v29 = vld [vmem:[#allocation2 + $0x38] sm:$0x10]  ;;  %396 = vst [vmem:[#allocation2 + $0x8] sm:$0x10] %v395_v26  ;;  %399 = vst [vmem:[#allocation2 + $0x18] sm:$0x10] %v398_v27 }
  0xb8   : > { %v401_v30 = vsel %vm3489_vm5, 0, %v400_v28  ;;  %v404_v31 = vsel %vm3489_vm5, 0, %v403_v29  ;;  %v406_v32 = vld [vmem:[#allocation2 + $0x48] sm:$0x10]  ;;  %v409_v33 = vld [vmem:[#allocation2 + $0x58] sm:$0x10]  ;;  %2672 = vmatpush3.bf16.msra.mxu0 %v2881_v44 }
  0xb9   : > { %402 = vst [vmem:[#allocation2 + $0x28] sm:$0x10] %v401_v30  ;;  %405 = vst [vmem:[#allocation2 + $0x38] sm:$0x10] %v404_v31  ;;  %v407_v34 = vsel %vm3489_vm5, 0, %v406_v32  ;;  %v410_v35 = vsel %vm3489_vm5, 0, %v409_v33 }
  0xba   : > { %v412_v36 = vld [vmem:[#allocation2 + $0x68] sm:$0x10]  ;;  %v415_v37 = vld [vmem:[#allocation2 + $0x78] sm:$0x10]  ;;  %408 = vst [vmem:[#allocation2 + $0x48] sm:$0x10] %v407_v34 }
  0xbb   : > { %411 = vst [vmem:[#allocation2 + $0x58] sm:$0x10] %v410_v35  ;;  %v413_v38 = vsel %vm3489_vm5, 0, %v412_v36  ;;  %v416_v39 = vsel %vm3489_vm5, 0, %v415_v37  ;;  %v418_v40 = vld [vmem:[#allocation2 + $0x88] sm:$0x10] }
  0xbc   : > { %v421_v41 = vld [vmem:[#allocation2 + $0x98] sm:$0x10]  ;;  %414 = vst [vmem:[#allocation2 + $0x68] sm:$0x10] %v413_v38  ;;  %417 = vst [vmem:[#allocation2 + $0x78] sm:$0x10] %v416_v39 }
  0xbd   : > { %v419_v42 = vsel %vm3489_vm5, 0, %v418_v40  ;;  %v422_v43 = vsel %vm3489_vm5, 0, %v421_v41  ;;  %v2882_v45 = vld [vmem:[#allocation6 + $0x18] sm:$0xff]   ;;  %v2883_v46 = vld [vmem:[#allocation6 + $0x20] sm:$0xff]   ;;  %v2884_v48 = vld [vmem:[#allocation6 + $0x28] sm:$0xff]   ;;  %s3562_s22 = scalar_lea.vmem [#allocation11], %s3469_s16 }
  0xbe   : > { %420 = vst [vmem:[#allocation2 + $0x88] sm:$0x10] %v419_v42  ;;  %423 = vst [vmem:[#allocation2 + $0x98] sm:$0x10] %v422_v43  ;;  %2673 = vmatprep.subr.bf16.mxu0 %v2882_v45  ;;  %v2887_v47 = vld [vmem:[%s3524_s19] sm:$0xff]   ;;  %v2885_v49 = vld [vmem:[#allocation6 + $0x30] sm:$0xff]  }
  0xbf   : > { %2674 = vmatpush3.bf16.msra.mxu0 %v2882_v45  ;;  %2683 = vmatprep.mubr.bf16.mxu0 %v2887_v47  ;;  %v2886_v50 = vld [vmem:[#allocation6 + $0x38] sm:$0xff]   ;;  %v2888_v51 = vld [vmem:[%s3524_s19 + $0x8] sm:$0xff]   ;;  %v2889_v52 = vld [vmem:[%s3524_s19 + $0x10] sm:$0xff]   ;;  %p2472_p4 = scmp.ne.s32.totalorder %s3135_s30, 0 }
  0xc0   : > { %2675 = vmatprep.subr.bf16.mxu0 %v2883_v46  ;;  %v2890_v53 = vld [vmem:[%s3524_s19 + $0x18] sm:$0xff]   ;;  %v2891_v54 = vld [vmem:[%s3524_s19 + $0x20] sm:$0xff]   ;;  %v2892_v55 = vld [vmem:[%s3524_s19 + $0x28] sm:$0xff]  }
  0xc1   : > { %v2893_v56 = vld [vmem:[%s3524_s19 + $0x30] sm:$0xff]   ;;  %v2894_v57 = vld [vmem:[%s3524_s19 + $0x38] sm:$0xff]   ;;  %v2895_v58 = vld [vmem:[%s3524_s19 + $0x40] sm:$0xff]  }
  0xc2   : > { %v2896_v59 = vld [vmem:[%s3524_s19 + $0x48] sm:$0xff]   ;;  %v3539_v60 = vld [vmem:[%s4288_s2] ss:$0 sm:$0xff] }
  0xc3   : > { %2676 = vmatpush3.bf16.msra.mxu0 %v2883_v46 }
  0xc4   : > { %2677 = vmatprep.subr.bf16.mxu0 %v2884_v48 }
  0xc7   : > { %2678 = vmatpush3.bf16.msra.mxu0 %v2884_v48 }
  0xc8   : > { %2679 = vmatprep.subr.bf16.mxu0 %v2885_v49 }
  0xcb   : > { %2680 = vmatpush3.bf16.msra.mxu0 %v2885_v49 }
  0xcc   : > { %2681 = vmatprep.subr.bf16.mxu0 %v2886_v50 }
  0xcf   : > { %2682 = vmatpush3.bf16.msra.mxu0 %v2886_v50 }
  0xd2   : > { %2684 = vmatmul.mubr.bf16.vlgmr.msra.gmra.mrb[0].mxu0 %v2888_v51 }
  0xd3   : > { %2687 = vmatprep.mubr.bf16.mxu0 %v2889_v52 }
  0xda   : > { %2688 = vmatmul.mubr.bf16.gmra.mrb[4].mxu0 %v2890_v53 }
  0xdb   : > { %2691 = vmatprep.mubr.bf16.mxu0 %v2891_v54 }
  0xe2   : > { %2692 = vmatmul.mubr.bf16.gmra.mrb[8].mxu0 %v2892_v55 }
  0xe3   : > { %2695 = vmatprep.mubr.bf16.mxu0 %v2893_v56 }
  0xea   : > { %2696 = vmatmul.mubr.bf16.gmra.mrb[12].mxu0 %v2894_v57 }
  0xeb   : > { %2699 = vmatprep.mubr.bf16.mxu0 %v2895_v58 }
  0xf2   : > { %2700 = vmatmul.mubr.bf16.gmra.mrb[16].mxu0 %v2896_v59 }
 0x1a5   : > { %v2685_v61 = vpop.f32.mrb[0].mxu0 }
 0x1a6   : > { %v621_v62 = vadd.f32 %v2685_v61, %v3539_v60  ;;  %v612_v63 = vpop.f32.mrb[1].mxu0 }
 0x1a7   : > { %v613_v0 = vadd.f32 %v3539_v60, %v612_v63  ;;  %v2686_v1 = vpop.f32.mrb[2].mxu0 }
 0x1a8   : > { %v693_v2 = vmax.f32 %v621_v62, 0.0  ;;  %v624_v3 = vadd.f32 %v2686_v1, %v3539_v60  ;;  %v615_v4 = vpop.f32.mrb[3].mxu0 }
 0x1a9   : > { %v691_v5 = vmax.f32 %v613_v0, 0.0  ;;  %v616_v6 = vadd.f32 %v3539_v60, %v615_v4 }
 0x1aa   : > { %v694_v7 = vmax.f32 %v624_v3, 0.0  ;;  %v713_v9 = vmin.f32 %v693_v2, 6.0 }
 0x1ab   : > { %v692_v8 = vmax.f32 %v616_v6, 0.0  ;;  %v711_v11 = vmin.f32 %v691_v5, 6.0 }
 0x1ac   : > { %v714_v10 = vmin.f32 %v694_v7, 6.0 }
 0x1ad   : > { %v712_v12 = vmin.f32 %v692_v8, 6.0  ;;  %v2689_v13 = vpop.f32.mrb[4].mxu0 }
 0x1ae   : > { %v732_v14 = vpack.c.bf16 %v714_v10, %v713_v9  ;;  %v637_v15 = vadd.f32 %v2689_v13, %v3539_v60  ;;  %v628_v16 = vpop.f32.mrb[5].mxu0 }
 0x1af   : > { %v731_v17 = vpack.c.bf16 %v712_v12, %v711_v11  ;;  %v629_v18 = vadd.f32 %v3539_v60, %v628_v16  ;;  %v2690_v19 = vpop.f32.mrb[6].mxu0 }
 0x1b0   : > { %v752_v20 = vrot.slane %v732_v14, 4  ;;  %v697_v21 = vmax.f32 %v637_v15, 0.0  ;;  %v640_v22 = vadd.f32 %v2690_v19, %v3539_v60  ;;  %v631_v23 = vpop.f32.mrb[7].mxu0 }
 0x1b1   : > { %v751_v24 = vrot.slane %v731_v17, 4  ;;  %v695_v25 = vmax.f32 %v629_v18, 0.0  ;;  %v632_v26 = vadd.f32 %v3539_v60, %v631_v23 }
 0x1b2   : > { %773 = vst [vmem:[#allocation2 + $0x18] ss:$-4 sps:$4 sm:$0xff] %v752_v20   ;;  %v698_v27 = vmax.f32 %v640_v22, 0.0  ;;  %v717_v29 = vmin.f32 %v697_v21, 6.0 }
 0x1b3   : > { %771 = vst [vmem:[#allocation2 + $0x8] ss:$-4 sps:$4 sm:$0xff] %v751_v24   ;;  %v696_v28 = vmax.f32 %v632_v26, 0.0  ;;  %v715_v31 = vmin.f32 %v695_v25, 6.0 }
 0x1b4   : > { %v718_v30 = vmin.f32 %v698_v27, 6.0 }
 0x1b5   : > { %v716_v32 = vmin.f32 %v696_v28, 6.0  ;;  %v2693_v33 = vpop.f32.mrb[8].mxu0 }
 0x1b6   : > { %v734_v34 = vpack.c.bf16 %v718_v30, %v717_v29  ;;  %v653_v35 = vadd.f32 %v2693_v33, %v3539_v60  ;;  %v644_v36 = vpop.f32.mrb[9].mxu0 }
 0x1b7   : > { %v733_v37 = vpack.c.bf16 %v716_v32, %v715_v31  ;;  %v645_v38 = vadd.f32 %v3539_v60, %v644_v36  ;;  %v2694_v39 = vpop.f32.mrb[10].mxu0 }
 0x1b8   : > { %v754_v40 = vrot.slane %v734_v34, 4  ;;  %v701_v41 = vmax.f32 %v653_v35, 0.0  ;;  %v656_v42 = vadd.f32 %v2694_v39, %v3539_v60  ;;  %v647_v43 = vpop.f32.mrb[11].mxu0 }
 0x1b9   : > { %v753_v44 = vrot.slane %v733_v37, 4  ;;  %v699_v45 = vmax.f32 %v645_v38, 0.0  ;;  %v648_v46 = vadd.f32 %v3539_v60, %v647_v43 }
 0x1ba   : > { %777 = vst [vmem:[#allocation2 + $0x38] ss:$-4 sps:$4 sm:$0xff] %v754_v40   ;;  %v702_v47 = vmax.f32 %v656_v42, 0.0  ;;  %v721_v49 = vmin.f32 %v701_v41, 6.0 }
 0x1bb   : > { %775 = vst [vmem:[#allocation2 + $0x28] ss:$-4 sps:$4 sm:$0xff] %v753_v44   ;;  %v700_v48 = vmax.f32 %v648_v46, 0.0  ;;  %v719_v51 = vmin.f32 %v699_v45, 6.0 }
 0x1bc   : > { %v722_v50 = vmin.f32 %v702_v47, 6.0 }
 0x1bd   : > { %v720_v52 = vmin.f32 %v700_v48, 6.0  ;;  %v2697_v53 = vpop.f32.mrb[12].mxu0 }
 0x1be   : > { %v736_v54 = vpack.c.bf16 %v722_v50, %v721_v49  ;;  %v669_v55 = vadd.f32 %v2697_v53, %v3539_v60  ;;  %v660_v56 = vpop.f32.mrb[13].mxu0 }
 0x1bf   : > { %v735_v57 = vpack.c.bf16 %v720_v52, %v719_v51  ;;  %v661_v58 = vadd.f32 %v3539_v60, %v660_v56  ;;  %v2698_v59 = vpop.f32.mrb[14].mxu0 }
 0x1c0   : > { %v756_v61 = vrot.slane %v736_v54, 4  ;;  %v705_v62 = vmax.f32 %v669_v55, 0.0  ;;  %v672_v63 = vadd.f32 %v2698_v59, %v3539_v60  ;;  %v663_v0 = vpop.f32.mrb[15].mxu0 }
 0x1c1   : > { %v755_v1 = vrot.slane %v735_v57, 4  ;;  %v703_v2 = vmax.f32 %v661_v58, 0.0  ;;  %v664_v3 = vadd.f32 %v3539_v60, %v663_v0 }
 0x1c2   : > { %781 = vst [vmem:[#allocation2 + $0x58] ss:$-4 sps:$4 sm:$0xff] %v756_v61   ;;  %v706_v4 = vmax.f32 %v672_v63, 0.0  ;;  %v725_v6 = vmin.f32 %v705_v62, 6.0 }
 0x1c3   : > { %779 = vst [vmem:[#allocation2 + $0x48] ss:$-4 sps:$4 sm:$0xff] %v755_v1   ;;  %v704_v5 = vmax.f32 %v664_v3, 0.0  ;;  %v723_v8 = vmin.f32 %v703_v2, 6.0 }
 0x1c4   : > { %v726_v7 = vmin.f32 %v706_v4, 6.0 }
 0x1c5   : > { %v724_v9 = vmin.f32 %v704_v5, 6.0  ;;  %v2701_v10 = vpop.f32.mrb[16].mxu0 }
 0x1c6   : > { %v738_v11 = vpack.c.bf16 %v726_v7, %v725_v6  ;;  %v685_v12 = vadd.f32 %v2701_v10, %v3539_v60  ;;  %v676_v13 = vpop.f32.mrb[17].mxu0 }
 0x1c7   : > { %v737_v14 = vpack.c.bf16 %v724_v9, %v723_v8  ;;  %v677_v15 = vadd.f32 %v3539_v60, %v676_v13  ;;  %v2702_v16 = vpop.f32.mrb[18].mxu0 }
 0x1c8   : > { %v758_v17 = vrot.slane %v738_v11, 4  ;;  %v709_v18 = vmax.f32 %v685_v12, 0.0  ;;  %v688_v19 = vadd.f32 %v2702_v16, %v3539_v60  ;;  %v679_v20 = vpop.f32.mrb[19].mxu0 }
 0x1c9   : > { %v757_v21 = vrot.slane %v737_v14, 4  ;;  %v707_v22 = vmax.f32 %v677_v15, 0.0  ;;  %v680_v23 = vadd.f32 %v3539_v60, %v679_v20  ;;  %v3161_v60 = vmov (!%p2472_p4), 0  }
 0x1ca   : > { %785 = vst [vmem:[#allocation2 + $0x78] ss:$-4 sps:$4 sm:$0xff] %v758_v17   ;;  %v710_v24 = vmax.f32 %v688_v19, 0.0  ;;  %v729_v26 = vmin.f32 %v709_v18, 6.0  ;;  %795 = vst [vmem:[#allocation2] sm:$0xf0] (!%p2472_p4), %v3161_v60 }
 0x1cb   : > { %783 = vst [vmem:[#allocation2 + $0x68] ss:$-4 sps:$4 sm:$0xff] %v757_v21   ;;  %v708_v25 = vmax.f32 %v680_v23, 0.0  ;;  %v727_v28 = vmin.f32 %v707_v22, 6.0  ;;  %796 = vst [vmem:[#allocation2 + $0x8] sm:$0xf] (!%p2472_p4), %v3161_v60 }
 0x1cc   : > { %v730_v27 = vmin.f32 %v710_v24, 6.0 }
 0x1cd   : > { %v728_v29 = vmin.f32 %v708_v25, 6.0  ;;  %794 = sbr.rel (%p2472_p4) target bundleno = 468 (0x1d4), region = 68 }
 0x1ce   : > { %v740_v30 = vpack.c.bf16 %v730_v27, %v729_v26 }
 0x1cf   : > { %v739_v31 = vpack.c.bf16 %v728_v29, %v727_v28 }
 0x1d0   : > { %v760_v32 = vrot.slane %v740_v30, 4 }
 0x1d1   : > { %v759_v33 = vrot.slane %v739_v31, 4 }
 0x1d2   : > { %789 = vst [vmem:[#allocation2 + $0x98] ss:$-4 sps:$4 sm:$0xff] %v760_v32  }
 0x1d3   : > { %787 = vst [vmem:[#allocation2 + $0x88] ss:$-4 sps:$4 sm:$0xff] %v759_v33  }
 0x1d4 PF: > { %p2473_p3 = scmp.ne.s32.totalorder %s3135_s30, 1 }
 0x1d5   : > { %v3162_v34 = vmov (!%p2473_p3), 0  }
 0x1d6   : > { %800 = sbr.rel (%p2473_p3) target bundleno = 477 (0x1dd), region = 72  ;;  %802 = vst [vmem:[#allocation2 + $0x90] sm:$0xf0] (!%p2473_p3), %v3162_v34  ;;  %803 = vst [vmem:[#allocation2 + $0x98] sm:$0xf] (!%p2473_p3), %v3162_v34 }
 0x1dd PF: > { %v2897_v35 = vld [vmem:[#allocation9] sm:$0xff]   ;;  %v855_v36 = vlaneseq  ;;  %v2898_v37 = vld [vmem:[#allocation9 + $0x8] sm:$0xff]   ;;  %v2899_v39 = vld [vmem:[#allocation9 + $0x10] sm:$0xff]   ;;  %vm919_vm6 = vcmask 1046528   ;;  %vm1044_vm7 = vcmask 1045504   ;;  %s4345_s13 = sld [smem:[#allocation24_spill]] }
 0x1de   : > { %2703 = vmatprep.subr.bf16.mxu1 %v2897_v35  ;;  %v2900_v44 = vld [vmem:[#allocation9 + $0x18] sm:$0xff]   ;;  %v3572_v45 = vld [vmem:[#allocation8] sm:$0xff]  ;;  %v3584_v52 = vld [vmem:[#allocation2 + $0x10] sm:$0xff]  ;;  %vm1933_vm8 = vcmask 1040384   ;;  %s4346_s18 = sld [smem:[#allocation26_spill]]  ;;  %s4347_s3 = sld [smem:[#allocation17_spill]] }
 0x1df   : > { %v3566_v38 = vshrl.u32 %v855_v36, 7  ;;  %2704 = vmatpush3.bf16.msra.mxu1 %v2897_v35  ;;  %v807_v47 = vld [vmem:[#allocation2] sm:$0xff]  ;;  %v808_v48 = vld [vmem:[#allocation2 + $0x8] sm:$0xff]  ;;  %v3589_v58 = vld [vmem:[#allocation2 + $0x18] sm:$0xff]  ;;  %v1180_v59 = vunpack.c.l.bf16 %v3584_v52  ;;  %v3593_v61 = vunpack.c.h.bf16 %v3584_v52  ;;  %s2545_s20 = sshll.u32 %s3135_s30, 4  ;;  %s4348_s30 = sld [smem:[#allocation18_spill]] }
 0x1e0   : > { %2705 = vmatprep.subr.bf16.mxu1 %v2898_v37  ;;  %v823_v54 = vunpack.c.l.bf16 %v807_v47  ;;  %v824_v55 = vunpack.c.h.bf16 %v807_v47  ;;  %v825_v56 = vunpack.c.l.bf16 %v808_v48  ;;  %v826_v57 = vunpack.c.h.bf16 %v808_v48  ;;  %v2901_v0 = vld [vmem:[#allocation9 + $0x20] sm:$0xff]   ;;  %v1513_v17 = vld [vmem:[#allocation2 + $0x20] sm:$0xff]  ;;  %v2902_v18 = vld [vmem:[#allocation9 + $0x28] sm:$0xff]   ;;  %s2315_s14 = sshll.u32 %s3562_s22, 4  ;;  %s4349_s8 = sld [smem:[#allocation27_spill]]  ;;  %s4219_s14 = int_to_ptr.vmem [resolvable:$true] %s2315_s14 }
 0x1e1   : > { %v857_v40 = vsub.s32 0, %v3566_v38  ;;  %v885_v41 = vsub.s32 1, %v3566_v38  ;;  %v994_v42 = vsub.s32 2, %v3566_v38  ;;  %v1214_v43 = vsub.s32 3, %v3566_v38  ;;  %v1514_v22 = vld [vmem:[#allocation2 + $0x28] sm:$0xff]  ;;  %v2903_v36 = vld [vmem:[#allocation9 + $0x30] sm:$0xff]  }
 0x1e2   : > { %v1242_v46 = vsub.s32 4, %v3566_v38  ;;  %v3596_v62 = vunpack.c.l.bf16 %v3589_v58  ;;  %v1183_v63 = vunpack.c.h.bf16 %v3589_v58  ;;  %v1350_v21 = vsub.s32 5, %v3566_v38  ;;  %s4225_s23 = scalar_lea.sflag [#allocation5], %s352_s5  ;;  %s3021_s7 = scalar_lea.vmem %s4219_s14, 1024 }
 0x1e3   : > { %2706 = vmatpush3.bf16.msra.mxu1 %v2898_v37  ;;  %v3576_v49 = vrot.slane %v3572_v45, %v857_v40  ;;  %v3579_v50 = vrot.slane %v3572_v45, %v885_v41  ;;  %v3582_v51 = vrot.slane %v3572_v45, %v994_v42  ;;  %v3587_v53 = vrot.slane %v3572_v45, %v1214_v43  ;;  %v3623_v24 = vld [vmem:[%s4345_s13] ss:$0 sm:$0xff]  ;;  %v3640_v42 = vld [vmem:[#allocation8 + $0x8] ss:$0 sm:$0xff]  ;;  %p3022_p7 = scmp.ne.s32.totalorder %s4219_s14, %s3021_s7  ;;  %s3163_s12 = smov [#allocation11]  }
 0x1e4   : > { %2707 = vmatprep.subr.bf16.mxu1 %v2899_v39  ;;  %v3615_v20 = vrot.slane %v3572_v45, %v1242_v46  ;;  %v3618_v23 = vunpack.c.l.bf16 %v1513_v17  ;;  %v3633_v60 = vrot.slane %v3572_v45, %v1350_v21  ;;  %v3635_v34 = vunpack.c.h.bf16 %v1513_v17  ;;  %s2522_s15 = sshll.u32 %s4347_s3, 5  ;;  %s3025_s27 = sshll.u32 %s3163_s12, 4  ;;  %s3026_s27 = int_to_ptr.vmem [resolvable:$false] %s3025_s27 }
 0x1e5   : > { %v859_v1 = vmul.f32 %v3576_v49, %v823_v54  ;;  %v860_v2 = vmul.f32 %v3576_v49, %v824_v55  ;;  %v861_v3 = vmul.f32 %v3576_v49, %v825_v56  ;;  %v887_v4 = vmul.f32 %v3579_v50, %v824_v55  ;;  %s2312_s17 = sadd.s32 %s2545_s20, %s2522_s15  ;;  %p4351_p9 = scmp.ne.s32.totalorder %s4348_s30, 0 }
 0x1e6   : > { %v888_v5 = vmul.f32 %v3579_v50, %v825_v56  ;;  %v996_v6 = vmul.f32 %v3582_v51, %v824_v55  ;;  %v997_v7 = vmul.f32 %v3582_v51, %v825_v56  ;;  %v998_v8 = vmul.f32 %v3582_v51, %v826_v57  ;;  %s2523_s16 = sshll.u32 %s2312_s17, 6  ;;  %s4350_s4 = smov %s4349_s8 }
 0x1e7   : > { %2708 = vmatpush3.bf16.msra.mxu1 %v2899_v39  ;;  %v920_v9 = vrot.slane %v887_v4, 1  ;;  %v1216_v10 = vmul.f32 %v3587_v53, %v1180_v59  ;;  %v1217_v11 = vmul.f32 %v3587_v53, %v3593_v61  ;;  %v1218_v12 = vmul.f32 %v3587_v53, %v3596_v62  ;;  %s4217_s6 = scalar_lea.hbm %s4349_s8, %s2523_s16  ;;  %p3023_p13 = pnand %p3022_p7, %p4351_p9 }
 0x1e8   : > { %2709 = vmatprep.subr.bf16.mxu1 %v2900_v44  ;;  %v921_v13 = vrot.slane %v888_v5, 1  ;;  %v1045_v14 = vrot.slane %v996_v6, 2  ;;  %v1046_v15 = vrot.slane %v997_v7, 2  ;;  %v1048_v16 = vrot.slane %v998_v8, 2  ;;  %p3028_p0 = scmp.lt.s32.totalorder %s4219_s14, %s3026_s27 }
 0x1e9   : > { %v968_v19 = vadd.f32 %v920_v9, %v859_v1  ;;  %v1244_v31 = vmul.f32 %v3615_v20, %v3593_v61  ;;  %v1245_v32 = vmul.f32 %v3615_v20, %v3596_v62  ;;  %v3637_v35 = vunpack.c.l.bf16 %v1514_v22  ;;  %p3024_p11 = pneg %p3023_p13 }
 0x1ea   : > { %v922_v25 = vsel %vm919_vm6, %v920_v9, %v921_v13  ;;  %v970_v26 = vadd.f32 %v921_v13, %v861_v3  ;;  %v1047_v27 = vsel %vm1044_vm7, %v1045_v14, %v1046_v15  ;;  %v1049_v28 = vsel %vm1044_vm7, %v1046_v15, %v1048_v16  ;;  %v2904_v3 = vld [vmem:[#allocation9 + $0x38] sm:$0xff]  }
 0x1eb   : > { %2710 = vmatpush3.bf16.msra.mxu1 %v2900_v44  ;;  %v969_v29 = vadd.f32 %v922_v25, %v860_v2  ;;  %v1109_v30 = vadd.f32 %v1045_v14, %v968_v19  ;;  %v1276_v40 = vrot.slane %v1244_v31, 1  ;;  %v1277_v41 = vrot.slane %v1245_v32, 1 }
 0x1ec   : > { %2711 = vmatprep.subr.bf16.mxu1 %v2901_v0  ;;  %v1111_v33 = vadd.f32 %v1049_v28, %v970_v26  ;;  %v1352_v44 = vmul.f32 %v3633_v60, %v3593_v61  ;;  %v1353_v46 = vmul.f32 %v3633_v60, %v3596_v62  ;;  %v1354_v47 = vmul.f32 %v3633_v60, %v1183_v63 }
 0x1ed   : > { %v1110_v37 = vadd.f32 %v1047_v27, %v969_v29  ;;  %v1139_v39 = vadd.f32 %v3623_v24, %v1109_v30  ;;  %v1278_v54 = vsel %vm919_vm6, %v1276_v40, %v1277_v41  ;;  %v1324_v55 = vadd.f32 %v1276_v40, %v1216_v10 }
 0x1ee   : > { %v1141_v43 = vadd.f32 %v3623_v24, %v1111_v33  ;;  %v1326_v56 = vadd.f32 %v1277_v41, %v1218_v12  ;;  %v1325_v57 = vadd.f32 %v1278_v54, %v1217_v11  ;;  %v1401_v1 = vrot.slane %v1353_v46, 2 }
 0x1ef   : > { %2712 = vmatpush3.bf16.msra.mxu1 %v2901_v0  ;;  %v1140_v48 = vadd.f32 %v3623_v24, %v1110_v37  ;;  %v1400_v0 = vrot.slane %v1352_v44, 2  ;;  %v1403_v2 = vrot.slane %v1354_v47, 2  ;;  %v3652_v4 = vunpack.c.h.bf16 %v1514_v22 }
 0x1f0   : > { %2713 = vmatprep.subr.bf16.mxu1 %v2902_v18  ;;  %v1563_v5 = vsub.s32 6, %v3566_v38  ;;  %v1591_v6 = vsub.s32 7, %v3566_v38  ;;  %v1701_v7 = vmul.f32 %v3640_v42, %v3635_v34  ;;  %v1702_v11 = vmul.f32 %v3640_v42, %v3637_v35 }
 0x1f1   : > { %v1402_v8 = vsel %vm1044_vm7, %v1400_v0, %v1401_v1  ;;  %v1404_v9 = vsel %vm1044_vm7, %v1401_v1, %v1403_v2  ;;  %v1464_v10 = vadd.f32 %v1400_v0, %v1324_v55  ;;  %v1703_v16 = vmul.f32 %v3640_v42, %v3652_v4 }
 0x1f2   : > { %v1465_v12 = vadd.f32 %v1402_v8, %v1325_v57  ;;  %v1466_v13 = vadd.f32 %v1404_v9, %v1326_v56  ;;  %v3663_v14 = vrot.slane %v3572_v45, %v1563_v5  ;;  %v3666_v15 = vrot.slane %v3572_v45, %v1591_v6 }
 0x1f3   : > { %2714 = vmatpush3.bf16.msra.mxu1 %v2902_v18  ;;  %v1488_v38 = vadd.f32 %v1464_v10, %v1139_v39  ;;  %v1749_v17 = vrot.slane %v1701_v7, 2  ;;  %v1750_v18 = vrot.slane %v1702_v11, 2  ;;  %v1752_v29 = vrot.slane %v1703_v16, 2 }
 0x1f4   : > { %2715 = vmatprep.subr.bf16.mxu1 %v2903_v36  ;;  %v1489_v19 = vadd.f32 %v1465_v12, %v1140_v48  ;;  %v1490_v21 = vadd.f32 %v1466_v13, %v1141_v43  ;;  %v1565_v22 = vmul.f32 %v3663_v14, %v3618_v23  ;;  %v1566_v25 = vmul.f32 %v3663_v14, %v3635_v34 }
 0x1f5   : > { %v1567_v45 = vmul.f32 %v3663_v14, %v3637_v35  ;;  %v1593_v26 = vmul.f32 %v3666_v15, %v3635_v34  ;;  %v1594_v27 = vmul.f32 %v3666_v15, %v3637_v35  ;;  %v1751_v28 = vsel %vm1044_vm7, %v1749_v17, %v1750_v18 }
 0x1f6   : > { %v862_v30 = vmul.f32 %v1180_v59, %v3576_v49  ;;  %v863_v31 = vmul.f32 %v3593_v61, %v3576_v49  ;;  %v864_v32 = vmul.f32 %v3596_v62, %v3576_v49  ;;  %v889_v37 = vmul.f32 %v3593_v61, %v3579_v50 }
 0x1f7   : > { %2716 = vmatpush3.bf16.msra.mxu1 %v2903_v36  ;;  %v1625_v33 = vrot.slane %v1593_v26, 1  ;;  %v1626_v36 = vrot.slane %v1594_v27, 1  ;;  %v890_v39 = vmul.f32 %v3596_v62, %v3579_v50  ;;  %v1753_v40 = vsel %vm1044_vm7, %v1750_v18, %v1752_v29 }
 0x1f8   : > { %2717 = vmatprep.subr.bf16.mxu1 %v2904_v3  ;;  %v999_v52 = vmul.f32 %v3593_v61, %v3582_v51  ;;  %v1000_v59 = vmul.f32 %v3596_v62, %v3582_v51  ;;  %v1001_v41 = vmul.f32 %v1183_v63, %v3582_v51  ;;  %v923_v47 = vrot.slane %v889_v37, 1 }
 0x1f9   : > { %v1627_v43 = vsel %vm919_vm6, %v1625_v33, %v1626_v36  ;;  %v1673_v44 = vadd.f32 %v1625_v33, %v1565_v22  ;;  %v1675_v46 = vadd.f32 %v1626_v36, %v1567_v45  ;;  %v924_v54 = vrot.slane %v890_v39, 1 }
 0x1fa   : > { %v1674_v48 = vadd.f32 %v1627_v43, %v1566_v25  ;;  %v1050_v55 = vrot.slane %v999_v52, 2  ;;  %v1051_v56 = vrot.slane %v1000_v59, 2  ;;  %v971_v61 = vadd.f32 %v923_v47, %v862_v30 }
 0x1fb   : > { %2718 = vmatpush3.bf16.msra.mxu1 %v2904_v3  ;;  %v1813_v57 = vadd.f32 %v1749_v17, %v1673_v44  ;;  %v1815_v0 = vadd.f32 %v1753_v40, %v1675_v46  ;;  %v1053_v1 = vrot.slane %v1001_v41, 2  ;;  %v925_v62 = vsel %vm919_vm6, %v923_v47, %v924_v54  ;;  %v1516_v44 = vld [vmem:[#allocation2 + $0x38] sm:$0xff] }
 0x1fc   : > { %v1814_v2 = vadd.f32 %v1751_v28, %v1674_v48  ;;  %v973_v3 = vadd.f32 %v924_v54, %v864_v32  ;;  %v1052_v58 = vsel %vm1044_vm7, %v1050_v55, %v1051_v56  ;;  %v972_v6 = vadd.f32 %v925_v62, %v863_v31  ;;  %v1515_v31 = vld [vmem:[#allocation2 + $0x30] sm:$0xff] }
 0x1fd   : > { %v1837_v63 = vadd.f32 %v1813_v57, %v1488_v38  ;;  %v1839_v5 = vadd.f32 %v1815_v0, %v1490_v21  ;;  %v1054_v7 = vsel %vm1044_vm7, %v1051_v56, %v1053_v1  ;;  %v1112_v9 = vadd.f32 %v1050_v55, %v971_v61 }
 0x1fe   : > { %v1838_v8 = vadd.f32 %v1814_v2, %v1489_v19  ;;  %v1114_v10 = vadd.f32 %v1054_v7, %v973_v3  ;;  %v1219_v11 = vmul.f32 %v3618_v23, %v3587_v53  ;;  %v1113_v16 = vadd.f32 %v1052_v58, %v972_v6 }
 0x1ff   : > { %v1861_v12 = vmax.f32 %v1837_v63, 0.0  ;;  %v1863_v13 = vmax.f32 %v1839_v5, 0.0  ;;  %v1220_v17 = vmul.f32 %v3635_v34, %v3587_v53  ;;  %v1142_v22 = vadd.f32 %v3623_v24, %v1112_v9 }
 0x200   : > { %v1862_v18 = vmax.f32 %v1838_v8, 0.0  ;;  %v1144_v38 = vadd.f32 %v3623_v24, %v1114_v10  ;;  %v1221_v21 = vmul.f32 %v3637_v35, %v3587_v53  ;;  %v1143_v45 = vadd.f32 %v3623_v24, %v1113_v16 }
 0x201   : > { %v1885_v19 = vmin.f32 %v1861_v12, 6.0  ;;  %v1887_v25 = vmin.f32 %v1863_v13, 6.0  ;;  %v1246_v26 = vmul.f32 %v3635_v34, %v3615_v20  ;;  %v1247_v28 = vmul.f32 %v3637_v35, %v3615_v20 }
 0x202   : > { %v1886_v27 = vmin.f32 %v1862_v18, 6.0  ;;  %v1355_v29 = vmul.f32 %v3635_v34, %v3633_v60  ;;  %v1356_v30 = vmul.f32 %v3637_v35, %v3633_v60  ;;  %v1357_v37 = vmul.f32 %v3652_v4, %v3633_v60 }
 0x203   : > { %v1934_v32 = vrot.slane %v1885_v19, 7  ;;  %v1937_v33 = vrot.slane %v1887_v25, 7  ;;  %v1279_v36 = vrot.slane %v1246_v26, 1  ;;  %v1280_v40 = vrot.slane %v1247_v28, 1 }
 0x204   : > { %v1935_v39 = vrot.slane %v1886_v27, 7  ;;  %v1405_v52 = vrot.slane %v1355_v29, 2  ;;  %v1406_v59 = vrot.slane %v1356_v30, 2  ;;  %v1408_v43 = vrot.slane %v1357_v37, 2 }
 0x205   : > { %v1327_v41 = vadd.f32 %v1279_v36, %v1219_v11  ;;  %v3723_v46 = vunpack.c.l.bf16 %v1515_v31  ;;  %v3725_v47 = vunpack.c.h.bf16 %v1515_v31  ;;  %v1281_v55 = vsel %vm919_vm6, %v1279_v36, %v1280_v40 }
 0x206   : > { %v1936_v48 = vsel %vm1933_vm8, %v1934_v32, %v1935_v39  ;;  %v1938_v54 = vsel %vm1933_vm8, %v1935_v39, %v1937_v33  ;;  %v1329_v56 = vadd.f32 %v1280_v40, %v1221_v21  ;;  %v1328_v0 = vadd.f32 %v1281_v55, %v1220_v17 }
 0x207   : > { %v1990_v57 = vpack.c.bf16 %v1938_v54, %v1936_v48  ;;  %v1407_v61 = vsel %vm1044_vm7, %v1405_v52, %v1406_v59  ;;  %v1409_v1 = vsel %vm1044_vm7, %v1406_v59, %v1408_v43  ;;  %v1467_v2 = vadd.f32 %v1405_v52, %v1327_v41 }
 0x208   : > { %v1469_v62 = vadd.f32 %v1409_v1, %v1329_v56  ;;  %v3732_v3 = vunpack.c.l.bf16 %v1516_v44  ;;  %v3734_v58 = vunpack.c.h.bf16 %v1516_v44  ;;  %v1468_v63 = vadd.f32 %v1407_v61, %v1328_v0 }
 0x209   : > { %2719 = vmatprep.mubr.bf16.mxu1 %v1990_v57  ;;  %v1568_v5 = vmul.f32 %v3663_v14, %v3723_v46  ;;  %v1569_v6 = vmul.f32 %v3663_v14, %v3725_v47  ;;  %v1595_v7 = vmul.f32 %v3666_v15, %v3725_v47  ;;  %v1491_v8 = vadd.f32 %v1467_v2, %v1142_v22 }
 0x20a   : > { %v1493_v9 = vadd.f32 %v1469_v62, %v1144_v38  ;;  %v1570_v10 = vmul.f32 %v3663_v14, %v3732_v3  ;;  %v1596_v11 = vmul.f32 %v3666_v15, %v3732_v3  ;;  %v1492_v12 = vadd.f32 %v1468_v63, %v1143_v45 }
 0x20b   : > { %v1628_v13 = vrot.slane %v1595_v7, 1  ;;  %v1704_v16 = vmul.f32 %v3640_v42, %v3725_v47  ;;  %v1705_v17 = vmul.f32 %v3640_v42, %v3732_v3  ;;  %v1706_v21 = vmul.f32 %v3640_v42, %v3734_v58 }
 0x20c   : > { %v1629_v18 = vrot.slane %v1596_v11, 1  ;;  %v865_v22 = vmul.f32 %v3618_v23, %v3576_v49  ;;  %v866_v38 = vmul.f32 %v3635_v34, %v3576_v49  ;;  %v867_v26 = vmul.f32 %v3637_v35, %v3576_v49 }
 0x20d   : > { %v1676_v19 = vadd.f32 %v1628_v13, %v1568_v5  ;;  %v1754_v25 = vrot.slane %v1704_v16, 2  ;;  %v1755_v45 = vrot.slane %v1705_v17, 2  ;;  %v1757_v29 = vrot.slane %v1706_v21, 2 }
 0x20e   : > { %v1630_v27 = vsel %vm919_vm6, %v1628_v13, %v1629_v18  ;;  %v1678_v28 = vadd.f32 %v1629_v18, %v1570_v10  ;;  %v891_v30 = vmul.f32 %v3635_v34, %v3579_v50  ;;  %v892_v33 = vmul.f32 %v3637_v35, %v3579_v50 }
 0x20f   : > { %v1677_v31 = vadd.f32 %v1630_v27, %v1569_v6  ;;  %v1756_v32 = vsel %vm1044_vm7, %v1754_v25, %v1755_v45  ;;  %v1816_v23 = vadd.f32 %v1754_v25, %v1676_v19  ;;  %v1758_v36 = vsel %vm1044_vm7, %v1755_v45, %v1757_v29  ;;  %v1517_v29 = vld [vmem:[#allocation2 + $0x40] sm:$0xff] }
 0x210   : > { %v926_v37 = vrot.slane %v891_v30, 1  ;;  %v1002_v39 = vmul.f32 %v3635_v34, %v3582_v51  ;;  %v1003_v40 = vmul.f32 %v3637_v35, %v3582_v51  ;;  %v1818_v59 = vadd.f32 %v1758_v36, %v1678_v28 }
 0x211   : > { %v1817_v52 = vadd.f32 %v1756_v32, %v1677_v31  ;;  %v1840_v41 = vadd.f32 %v1816_v23, %v1491_v8  ;;  %v927_v43 = vrot.slane %v892_v33, 1  ;;  %v1004_v48 = vmul.f32 %v3652_v4, %v3582_v51  ;;  %v1518_v23 = vld [vmem:[#allocation2 + $0x48] sm:$0xff] }
 0x212   : > { %v974_v44 = vadd.f32 %v926_v37, %v865_v22  ;;  %v1055_v54 = vrot.slane %v1002_v39, 2  ;;  %v1056_v55 = vrot.slane %v1003_v40, 2  ;;  %v1842_v57 = vadd.f32 %v1818_v59, %v1493_v9 }
 0x213   : > { %v1841_v56 = vadd.f32 %v1817_v52, %v1492_v12  ;;  %v1864_v0 = vmax.f32 %v1840_v41, 0.0  ;;  %v928_v61 = vsel %vm919_vm6, %v926_v37, %v927_v43  ;;  %v976_v34 = vadd.f32 %v927_v43, %v867_v26 }
 0x214   : > { %v975_v1 = vadd.f32 %v928_v61, %v866_v38  ;;  %v1057_v2 = vsel %vm1044_vm7, %v1055_v54, %v1056_v55  ;;  %v1058_v35 = vrot.slane %v1004_v48, 2  ;;  %v1866_v63 = vmax.f32 %v1842_v57, 0.0 }
 0x215   : > { %v1865_v62 = vmax.f32 %v1841_v56, 0.0  ;;  %v1888_v5 = vmin.f32 %v1864_v0, 6.0  ;;  %v1115_v6 = vadd.f32 %v1055_v54, %v974_v44  ;;  %v1222_v4 = vmul.f32 %v3723_v46, %v3587_v53 }
 0x216   : > { %v1059_v7 = vsel %vm1044_vm7, %v1056_v55, %v1058_v35  ;;  %v1116_v8 = vadd.f32 %v1057_v2, %v975_v1  ;;  %v1223_v9 = vmul.f32 %v3725_v47, %v3587_v53  ;;  %v1890_v11 = vmin.f32 %v1866_v63, 6.0 }
 0x217   : > { %v1889_v10 = vmin.f32 %v1865_v62, 6.0  ;;  %v1939_v12 = vrot.slane %v1888_v5, 7  ;;  %v1117_v13 = vadd.f32 %v1059_v7, %v976_v34  ;;  %v1145_v16 = vadd.f32 %v3623_v24, %v1115_v6 }
 0x218   : > { %v1146_v17 = vadd.f32 %v3623_v24, %v1116_v8  ;;  %v1224_v18 = vmul.f32 %v3732_v3, %v3587_v53  ;;  %v1248_v21 = vmul.f32 %v3725_v47, %v3615_v20  ;;  %v1942_v38 = vrot.slane %v1890_v11, 7 }
 0x219   : > { %v1940_v22 = vrot.slane %v1889_v10, 7  ;;  %v1147_v19 = vadd.f32 %v3623_v24, %v1117_v13  ;;  %v1249_v25 = vmul.f32 %v3732_v3, %v3615_v20  ;;  %v1358_v26 = vmul.f32 %v3725_v47, %v3633_v60 }
 0x21a   : > { %v1282_v45 = vrot.slane %v1248_v21, 1  ;;  %v1359_v27 = vmul.f32 %v3732_v3, %v3633_v60  ;;  %v1360_v28 = vmul.f32 %v3734_v58, %v3633_v60  ;;  %v3795_v33 = vunpack.c.l.bf16 %v1517_v29 }
 0x21b   : > { %v1941_v30 = vsel %vm1933_vm8, %v1939_v12, %v1940_v22  ;;  %v1943_v31 = vsel %vm1933_vm8, %v1940_v22, %v1942_v38  ;;  %v1283_v32 = vrot.slane %v1249_v25, 1  ;;  %v1410_v39 = vrot.slane %v1358_v26, 2 }
 0x21c   : > { %v1991_v36 = vpack.c.bf16 %v1943_v31, %v1941_v30  ;;  %v1330_v37 = vadd.f32 %v1282_v45, %v1222_v4  ;;  %v1411_v40 = vrot.slane %v1359_v27, 2  ;;  %v1413_v41 = vrot.slane %v1360_v28, 2 }
 0x21d   : > { %v1284_v52 = vsel %vm919_vm6, %v1282_v45, %v1283_v32  ;;  %v1332_v59 = vadd.f32 %v1283_v32, %v1224_v18  ;;  %v3798_v43 = vunpack.c.h.bf16 %v1517_v29  ;;  %v3801_v55 = vunpack.c.l.bf16 %v1518_v23 }
 0x21e   : > { %2720 = vmatmul.mubr.bf16.vlgmr.msra.gmra.mrb[0].mxu1 %v1991_v36  ;;  %v1331_v44 = vadd.f32 %v1284_v52, %v1223_v9  ;;  %v1412_v48 = vsel %vm1044_vm7, %v1410_v39, %v1411_v40  ;;  %v1470_v54 = vadd.f32 %v1410_v39, %v1330_v37  ;;  %v1414_v56 = vsel %vm1044_vm7, %v1411_v40, %v1413_v41 }
 0x21f   : > { %v3804_v57 = vunpack.c.h.bf16 %v1518_v23  ;;  %v1571_v0 = vmul.f32 %v3663_v14, %v3795_v33  ;;  %v1572_v61 = vmul.f32 %v3663_v14, %v3798_v43  ;;  %v1472_v34 = vadd.f32 %v1414_v56, %v1332_v59 }
 0x220   : > { %v1471_v1 = vadd.f32 %v1412_v48, %v1331_v44  ;;  %v1494_v2 = vadd.f32 %v1470_v54, %v1145_v16  ;;  %v1573_v35 = vmul.f32 %v3663_v14, %v3801_v55  ;;  %v1597_v62 = vmul.f32 %v3666_v15, %v3798_v43 }
 0x221   : > { %v1598_v63 = vmul.f32 %v3666_v15, %v3801_v55  ;;  %v1707_v5 = vmul.f32 %v3640_v42, %v3798_v43  ;;  %v1708_v6 = vmul.f32 %v3640_v42, %v3801_v55  ;;  %v1496_v8 = vadd.f32 %v1472_v34, %v1147_v19 }
 0x222   : > { %v1495_v7 = vadd.f32 %v1471_v1, %v1146_v17  ;;  %v1709_v4 = vmul.f32 %v3640_v42, %v3804_v57  ;;  %v868_v9 = vmul.f32 %v3723_v46, %v3576_v49  ;;  %v1631_v10 = vrot.slane %v1597_v62, 1 }
 0x223   : > { %v1632_v11 = vrot.slane %v1598_v63, 1  ;;  %v1759_v12 = vrot.slane %v1707_v5, 2  ;;  %v1760_v13 = vrot.slane %v1708_v6, 2  ;;  %v869_v18 = vmul.f32 %v3725_v47, %v3576_v49 }
 0x224   : > { %v1762_v16 = vrot.slane %v1709_v4, 2  ;;  %v870_v21 = vmul.f32 %v3732_v3, %v3576_v49  ;;  %v893_v17 = vmul.f32 %v3725_v47, %v3579_v50  ;;  %v1679_v38 = vadd.f32 %v1631_v10, %v1571_v0  ;;  %v1519_v4 = vld [vmem:[#allocation2 + $0x50] sm:$0xff] }
 0x225   : > { %v1633_v22 = vsel %vm919_vm6, %v1631_v10, %v1632_v11  ;;  %v1681_v19 = vadd.f32 %v1632_v11, %v1573_v35  ;;  %v1761_v46 = vsel %vm1044_vm7, %v1759_v12, %v1760_v13  ;;  %v894_v26 = vmul.f32 %v3732_v3, %v3579_v50 }
 0x226   : > { %v1680_v25 = vadd.f32 %v1633_v22, %v1572_v61  ;;  %v1763_v45 = vsel %vm1044_vm7, %v1760_v13, %v1762_v16  ;;  %v929_v27 = vrot.slane %v893_v17, 1  ;;  %v1819_v28 = vadd.f32 %v1759_v12, %v1679_v38  ;;  %v1520_v38 = vld [vmem:[#allocation2 + $0x58] sm:$0xff] }
 0x227   : > { %v1821_v29 = vadd.f32 %v1763_v45, %v1681_v19  ;;  %v1005_v30 = vmul.f32 %v3725_v47, %v3582_v51  ;;  %v1006_v31 = vmul.f32 %v3732_v3, %v3582_v51  ;;  %v930_v23 = vrot.slane %v894_v26, 1 }
 0x228   : > { %v1820_v32 = vadd.f32 %v1761_v46, %v1680_v25  ;;  %v977_v36 = vadd.f32 %v929_v27, %v868_v9  ;;  %v1007_v37 = vmul.f32 %v3734_v58, %v3582_v51  ;;  %v1843_v39 = vadd.f32 %v1819_v28, %v1494_v2 }
 0x229   : > { %v1845_v40 = vadd.f32 %v1821_v29, %v1496_v8  ;;  %v1060_v52 = vrot.slane %v1005_v30, 2  ;;  %v1061_v59 = vrot.slane %v1006_v31, 2  ;;  %v931_v44 = vsel %vm919_vm6, %v929_v27, %v930_v23 }
 0x22a   : > { %v1844_v41 = vadd.f32 %v1820_v32, %v1495_v7  ;;  %v979_v48 = vadd.f32 %v930_v23, %v870_v21  ;;  %v1063_v54 = vrot.slane %v1007_v37, 2  ;;  %v1867_v56 = vmax.f32 %v1843_v39, 0.0 }
 0x22b   : > { %v1869_v47 = vmax.f32 %v1845_v40, 0.0  ;;  %v978_v0 = vadd.f32 %v931_v44, %v869_v18  ;;  %v1062_v3 = vsel %vm1044_vm7, %v1060_v52, %v1061_v59  ;;  %v1118_v34 = vadd.f32 %v1060_v52, %v977_v36 }
 0x22c   : > { %v1868_v61 = vmax.f32 %v1844_v41, 0.0  ;;  %v1064_v1 = vsel %vm1044_vm7, %v1061_v59, %v1063_v54  ;;  %v1225_v58 = vmul.f32 %v3795_v33, %v3587_v53  ;;  %v1891_v2 = vmin.f32 %v1867_v56, 6.0 }
 0x22d   : > { %v1893_v35 = vmin.f32 %v1869_v47, 6.0  ;;  %v1119_v62 = vadd.f32 %v1062_v3, %v978_v0  ;;  %v1120_v63 = vadd.f32 %v1064_v1, %v979_v48  ;;  %v1148_v6 = vadd.f32 %v3623_v24, %v1118_v34 }
 0x22e   : > { %v1892_v5 = vmin.f32 %v1868_v61, 6.0  ;;  %v1226_v7 = vmul.f32 %v3798_v43, %v3587_v53  ;;  %v1227_v8 = vmul.f32 %v3801_v55, %v3587_v53  ;;  %v1944_v9 = vrot.slane %v1891_v2, 7 }
 0x22f   : > { %v1947_v10 = vrot.slane %v1893_v35, 7  ;;  %v1149_v11 = vadd.f32 %v3623_v24, %v1119_v62  ;;  %v1150_v12 = vadd.f32 %v3623_v24, %v1120_v63  ;;  %v1250_v16 = vmul.f32 %v3798_v43, %v3615_v20 }
 0x230   : > { %v1945_v13 = vrot.slane %v1892_v5, 7  ;;  %v1251_v18 = vmul.f32 %v3801_v55, %v3615_v20  ;;  %v1361_v21 = vmul.f32 %v3798_v43, %v3633_v60  ;;  %v1362_v17 = vmul.f32 %v3801_v55, %v3633_v60 }
 0x231   : > { %v1363_v22 = vmul.f32 %v3804_v57, %v3633_v60  ;;  %v3863_v19 = vunpack.c.l.bf16 %v1519_v4  ;;  %v3865_v46 = vunpack.c.h.bf16 %v1519_v4  ;;  %v1285_v26 = vrot.slane %v1250_v16, 1 }
 0x232   : > { %v1946_v25 = vsel %vm1933_vm8, %v1944_v9, %v1945_v13  ;;  %v1948_v45 = vsel %vm1933_vm8, %v1945_v13, %v1947_v10  ;;  %v1286_v27 = vrot.slane %v1251_v18, 1  ;;  %v1415_v29 = vrot.slane %v1361_v21, 2 }
 0x233   : > { %v1992_v28 = vpack.c.bf16 %v1948_v45, %v1946_v25  ;;  %v1416_v30 = vrot.slane %v1362_v17, 2  ;;  %v1418_v31 = vrot.slane %v1363_v22, 2  ;;  %v1333_v23 = vadd.f32 %v1285_v26, %v1225_v58 }
 0x234   : > { %v1287_v32 = vsel %vm919_vm6, %v1285_v26, %v1286_v27  ;;  %v1335_v36 = vadd.f32 %v1286_v27, %v1227_v8  ;;  %v3870_v37 = vunpack.c.l.bf16 %v1520_v38  ;;  %v3874_v59 = vunpack.c.h.bf16 %v1520_v38 }
 0x235   : > { %2723 = vmatprep.mubr.bf16.mxu1 %v1992_v28  ;;  %v1334_v39 = vadd.f32 %v1287_v32, %v1226_v7  ;;  %v1417_v40 = vsel %vm1044_vm7, %v1415_v29, %v1416_v30  ;;  %v1419_v52 = vsel %vm1044_vm7, %v1416_v30, %v1418_v31  ;;  %v1473_v41 = vadd.f32 %v1415_v29, %v1333_v23 }
 0x236   : > { %v1475_v44 = vadd.f32 %v1419_v52, %v1335_v36  ;;  %v1574_v48 = vmul.f32 %v3663_v14, %v3863_v19  ;;  %v1575_v54 = vmul.f32 %v3663_v14, %v3865_v46  ;;  %v1576_v47 = vmul.f32 %v3663_v14, %v3870_v37 }
 0x237   : > { %v1474_v56 = vadd.f32 %v1417_v40, %v1334_v39  ;;  %v1599_v0 = vmul.f32 %v3666_v15, %v3865_v46  ;;  %v1600_v3 = vmul.f32 %v3666_v15, %v3870_v37  ;;  %v1497_v61 = vadd.f32 %v1473_v41, %v1148_v6 }
 0x238   : > { %v1499_v1 = vadd.f32 %v1475_v44, %v1150_v12  ;;  %v1710_v34 = vmul.f32 %v3640_v42, %v3865_v46  ;;  %v1711_v58 = vmul.f32 %v3640_v42, %v3870_v37  ;;  %v1712_v63 = vmul.f32 %v3640_v42, %v3874_v59 }
 0x239   : > { %v1498_v2 = vadd.f32 %v1474_v56, %v1149_v11  ;;  %v1634_v35 = vrot.slane %v1599_v0, 1  ;;  %v1635_v62 = vrot.slane %v1600_v3, 1  ;;  %v871_v8 = vmul.f32 %v3795_v33, %v3576_v49 }
 0x23a   : > { %v1764_v5 = vrot.slane %v1710_v34, 2  ;;  %v1765_v7 = vrot.slane %v1711_v58, 2  ;;  %v872_v6 = vmul.f32 %v3798_v43, %v3576_v49  ;;  %v1767_v12 = vrot.slane %v1712_v63, 2 }
 0x23b   : > { %v1636_v4 = vsel %vm919_vm6, %v1634_v35, %v1635_v62  ;;  %v1682_v9 = vadd.f32 %v1634_v35, %v1574_v48  ;;  %v1684_v10 = vadd.f32 %v1635_v62, %v1576_v47  ;;  %v873_v16 = vmul.f32 %v3801_v55, %v3576_v49 }
 0x23c   : > { %v1683_v13 = vadd.f32 %v1636_v4, %v1575_v54  ;;  %v1766_v11 = vsel %vm1044_vm7, %v1764_v5, %v1765_v7  ;;  %v895_v18 = vmul.f32 %v3798_v43, %v3579_v50  ;;  %v1768_v21 = vsel %vm1044_vm7, %v1765_v7, %v1767_v12  ;;  %v1522_v12 = vld [vmem:[#allocation2 + $0x68] sm:$0xff] }
 0x23d   : > { %v1822_v33 = vadd.f32 %v1764_v5, %v1682_v9  ;;  %v896_v17 = vmul.f32 %v3801_v55, %v3579_v50  ;;  %v1008_v22 = vmul.f32 %v3798_v43, %v3582_v51  ;;  %v1824_v25 = vadd.f32 %v1768_v21, %v1684_v10  ;;  %v1521_v10 = vld [vmem:[#allocation2 + $0x60] sm:$0xff] }
 0x23e   : > { %v1823_v38 = vadd.f32 %v1766_v11, %v1683_v13  ;;  %v932_v45 = vrot.slane %v895_v18, 1  ;;  %v1009_v26 = vmul.f32 %v3801_v55, %v3582_v51  ;;  %v1010_v29 = vmul.f32 %v3804_v57, %v3582_v51 }
 0x23f   : > { %v1846_v27 = vadd.f32 %v1822_v33, %v1497_v61  ;;  %v933_v28 = vrot.slane %v896_v17, 1  ;;  %v1065_v30 = vrot.slane %v1008_v22, 2  ;;  %v1848_v32 = vadd.f32 %v1824_v25, %v1499_v1 }
 0x240   : > { %v1847_v31 = vadd.f32 %v1823_v38, %v1498_v2  ;;  %v980_v23 = vadd.f32 %v932_v45, %v871_v8  ;;  %v1066_v36 = vrot.slane %v1009_v26, 2  ;;  %v1068_v52 = vrot.slane %v1010_v29, 2 }
 0x241   : > { %v1870_v39 = vmax.f32 %v1846_v27, 0.0  ;;  %v934_v40 = vsel %vm919_vm6, %v932_v45, %v933_v28  ;;  %v982_v43 = vadd.f32 %v933_v28, %v873_v16  ;;  %v1872_v44 = vmax.f32 %v1848_v32, 0.0 }
 0x242   : > { %v1871_v41 = vmax.f32 %v1847_v31, 0.0  ;;  %v981_v48 = vadd.f32 %v934_v40, %v872_v6  ;;  %v1067_v55 = vsel %vm1044_vm7, %v1065_v30, %v1066_v36  ;;  %v1069_v56 = vsel %vm1044_vm7, %v1066_v36, %v1068_v52 }
 0x243   : > { %v1894_v54 = vmin.f32 %v1870_v39, 6.0  ;;  %v1121_v47 = vadd.f32 %v1065_v30, %v980_v23  ;;  %v1228_v57 = vmul.f32 %v3863_v19, %v3587_v53  ;;  %v1896_v3 = vmin.f32 %v1872_v44, 6.0 }
 0x244   : > { %v1895_v0 = vmin.f32 %v1871_v41, 6.0  ;;  %v1122_v61 = vadd.f32 %v1067_v55, %v981_v48  ;;  %v1123_v1 = vadd.f32 %v1069_v56, %v982_v43  ;;  %v1229_v2 = vmul.f32 %v3865_v46, %v3587_v53 }
 0x245   : > { %v1949_v34 = vrot.slane %v1894_v54, 7  ;;  %v1151_v58 = vadd.f32 %v3623_v24, %v1121_v47  ;;  %v1230_v35 = vmul.f32 %v3870_v37, %v3587_v53  ;;  %v1952_v63 = vrot.slane %v1896_v3, 7 }
 0x246   : > { %v1950_v62 = vrot.slane %v1895_v0, 7  ;;  %v1152_v5 = vadd.f32 %v3623_v24, %v1122_v61  ;;  %v1153_v7 = vadd.f32 %v3623_v24, %v1123_v1  ;;  %v1252_v8 = vmul.f32 %v3865_v46, %v3615_v20 }
 0x247   : > { %v1253_v6 = vmul.f32 %v3870_v37, %v3615_v20  ;;  %v1364_v4 = vmul.f32 %v3865_v46, %v3633_v60  ;;  %v1365_v9 = vmul.f32 %v3870_v37, %v3633_v60  ;;  %v1366_v16 = vmul.f32 %v3874_v59, %v3633_v60 }
 0x248   : > { %v1951_v13 = vsel %vm1933_vm8, %v1949_v34, %v1950_v62  ;;  %v1953_v11 = vsel %vm1933_vm8, %v1950_v62, %v1952_v63  ;;  %v3935_v18 = vunpack.c.l.bf16 %v1521_v10  ;;  %v1288_v33 = vrot.slane %v1252_v8, 1 }
 0x249   : > { %v1993_v21 = vpack.c.bf16 %v1953_v11, %v1951_v13  ;;  %v1289_v17 = vrot.slane %v1253_v6, 1  ;;  %v1420_v22 = vrot.slane %v1364_v4, 2  ;;  %v1421_v38 = vrot.slane %v1365_v9, 2 }
 0x24a   : > { %v1423_v25 = vrot.slane %v1366_v16, 2  ;;  %v3937_v45 = vunpack.c.h.bf16 %v1521_v10  ;;  %v3939_v26 = vunpack.c.l.bf16 %v1522_v12  ;;  %v1336_v28 = vadd.f32 %v1288_v33, %v1228_v57 }
 0x24b   : > { %2724 = vmatmul.mubr.bf16.gmra.mrb[4].mxu1 %v1993_v21  ;;  %v1290_v27 = vsel %vm919_vm6, %v1288_v33, %v1289_v17  ;;  %v1338_v29 = vadd.f32 %v1289_v17, %v1230_v35  ;;  %v3942_v30 = vunpack.c.h.bf16 %v1522_v12  ;;  %v1422_v32 = vsel %vm1044_vm7, %v1420_v22, %v1421_v38 }
 0x24c   : > { %v1337_v31 = vadd.f32 %v1290_v27, %v1229_v2  ;;  %v1424_v23 = vsel %vm1044_vm7, %v1421_v38, %v1423_v25  ;;  %v1577_v36 = vmul.f32 %v3663_v14, %v3935_v18  ;;  %v1476_v39 = vadd.f32 %v1420_v22, %v1336_v28 }
 0x24d   : > { %v1478_v40 = vadd.f32 %v1424_v23, %v1338_v29  ;;  %v1578_v43 = vmul.f32 %v3663_v14, %v3937_v45  ;;  %v1579_v52 = vmul.f32 %v3663_v14, %v3939_v26  ;;  %v1601_v44 = vmul.f32 %v3666_v15, %v3937_v45 }
 0x24e   : > { %v1477_v41 = vadd.f32 %v1422_v32, %v1337_v31  ;;  %v1602_v48 = vmul.f32 %v3666_v15, %v3939_v26  ;;  %v1713_v55 = vmul.f32 %v3640_v42, %v3937_v45  ;;  %v1500_v54 = vadd.f32 %v1476_v39, %v1151_v58 }
 0x24f   : > { %v1502_v56 = vadd.f32 %v1478_v40, %v1153_v7  ;;  %v1714_v47 = vmul.f32 %v3640_v42, %v3939_v26  ;;  %v1715_v57 = vmul.f32 %v3640_v42, %v3942_v30  ;;  %v1637_v3 = vrot.slane %v1601_v44, 1 }
 0x250   : > { %v1501_v0 = vadd.f32 %v1477_v41, %v1152_v5  ;;  %v1638_v61 = vrot.slane %v1602_v48, 1  ;;  %v1769_v1 = vrot.slane %v1713_v55, 2  ;;  %v874_v35 = vmul.f32 %v3863_v19, %v3576_v49 }
 0x251   : > { %v1770_v34 = vrot.slane %v1714_v47, 2  ;;  %v1772_v2 = vrot.slane %v1715_v57, 2  ;;  %v875_v62 = vmul.f32 %v3865_v46, %v3576_v49  ;;  %v1685_v63 = vadd.f32 %v1637_v3, %v1577_v36 }
 0x252   : > { %v1639_v58 = vsel %vm919_vm6, %v1637_v3, %v1638_v61  ;;  %v1687_v7 = vadd.f32 %v1638_v61, %v1579_v52  ;;  %v876_v8 = vmul.f32 %v3870_v37, %v3576_v49  ;;  %v897_v9 = vmul.f32 %v3865_v46, %v3579_v50 }
 0x253   : > { %v1686_v6 = vadd.f32 %v1639_v58, %v1578_v43  ;;  %v1771_v5 = vsel %vm1044_vm7, %v1769_v1, %v1770_v34  ;;  %v1773_v4 = vsel %vm1044_vm7, %v1770_v34, %v1772_v2  ;;  %v1825_v10 = vadd.f32 %v1769_v1, %v1685_v63 }
 0x254   : > { %v1827_v19 = vadd.f32 %v1773_v4, %v1687_v7  ;;  %v898_v12 = vmul.f32 %v3870_v37, %v3579_v50  ;;  %v1011_v13 = vmul.f32 %v3865_v46, %v3582_v51  ;;  %v935_v16 = vrot.slane %v897_v9, 1  ;;  %v1523_v7 = vld [vmem:[#allocation2 + $0x70] sm:$0xff] }
 0x255   : > { %v1826_v11 = vadd.f32 %v1771_v5, %v1686_v6  ;;  %v1012_v21 = vmul.f32 %v3870_v37, %v3582_v51  ;;  %v1013_v33 = vmul.f32 %v3874_v59, %v3582_v51  ;;  %v1849_v17 = vadd.f32 %v1825_v10, %v1500_v54 }
 0x256   : > { %v1851_v22 = vadd.f32 %v1827_v19, %v1502_v56  ;;  %v936_v38 = vrot.slane %v898_v12, 1  ;;  %v1070_v25 = vrot.slane %v1011_v13, 2  ;;  %v983_v28 = vadd.f32 %v935_v16, %v874_v35 }
 0x257   : > { %v1850_v27 = vadd.f32 %v1826_v11, %v1501_v0  ;;  %v1071_v29 = vrot.slane %v1012_v21, 2  ;;  %v1073_v31 = vrot.slane %v1013_v33, 2  ;;  %v1873_v32 = vmax.f32 %v1849_v17, 0.0 }
 0x258   : > { %v1875_v23 = vmax.f32 %v1851_v22, 0.0  ;;  %v937_v46 = vsel %vm919_vm6, %v935_v16, %v936_v38  ;;  %v985_v36 = vadd.f32 %v936_v38, %v876_v8  ;;  %v1124_v41 = vadd.f32 %v1070_v25, %v983_v28 }
 0x259   : > { %v1874_v39 = vmax.f32 %v1850_v27, 0.0  ;;  %v984_v40 = vadd.f32 %v937_v46, %v875_v62  ;;  %v1072_v37 = vsel %vm1044_vm7, %v1070_v25, %v1071_v29  ;;  %v1074_v43 = vsel %vm1044_vm7, %v1071_v29, %v1073_v31 }
 0x25a   : > { %v1897_v59 = vmin.f32 %v1873_v32, 6.0  ;;  %v1899_v52 = vmin.f32 %v1875_v23, 6.0  ;;  %v1126_v44 = vadd.f32 %v1074_v43, %v985_v36  ;;  %v1231_v54 = vmul.f32 %v3935_v18, %v3587_v53 }
 0x25b   : > { %v1898_v48 = vmin.f32 %v1874_v39, 6.0  ;;  %v1125_v55 = vadd.f32 %v1072_v37, %v984_v40  ;;  %v1232_v56 = vmul.f32 %v3937_v45, %v3587_v53  ;;  %v1154_v0 = vadd.f32 %v3623_v24, %v1124_v41 }
 0x25c   : > { %v1954_v47 = vrot.slane %v1897_v59, 7  ;;  %v1957_v57 = vrot.slane %v1899_v52, 7  ;;  %v1156_v3 = vadd.f32 %v3623_v24, %v1126_v44  ;;  %v1233_v34 = vmul.f32 %v3939_v26, %v3587_v53 }
 0x25d   : > { %v1955_v61 = vrot.slane %v1898_v48, 7  ;;  %v1155_v1 = vadd.f32 %v3623_v24, %v1125_v55  ;;  %v1254_v2 = vmul.f32 %v3937_v45, %v3615_v20  ;;  %v1255_v35 = vmul.f32 %v3939_v26, %v3615_v20  ;;  %v1524_v24 = vld [vmem:[#allocation2 + $0x78] sm:$0xff] }
 0x25e   : > { %v1367_v62 = vmul.f32 %v3937_v45, %v3633_v60  ;;  %v1368_v58 = vmul.f32 %v3939_v26, %v3633_v60  ;;  %v1369_v63 = vmul.f32 %v3942_v30, %v3633_v60  ;;  %v4005_v4 = vunpack.c.l.bf16 %v1523_v7 }
 0x25f   : > { %v1956_v8 = vsel %vm1933_vm8, %v1954_v47, %v1955_v61  ;;  %v1958_v6 = vsel %vm1933_vm8, %v1955_v61, %v1957_v57  ;;  %v1291_v5 = vrot.slane %v1254_v2, 1  ;;  %v1292_v10 = vrot.slane %v1255_v35, 1 }
 0x260   : > { %v1994_v9 = vpack.c.bf16 %v1958_v6, %v1956_v8  ;;  %v1425_v19 = vrot.slane %v1367_v62, 2  ;;  %v1426_v12 = vrot.slane %v1368_v58, 2  ;;  %v1428_v11 = vrot.slane %v1369_v63, 2 }
 0x261   : > { %v1339_v13 = vadd.f32 %v1291_v5, %v1231_v54  ;;  %v4007_v16 = vunpack.c.h.bf16 %v1523_v7  ;;  %v4009_v21 = vunpack.c.l.bf16 %v1524_v24  ;;  %v1293_v33 = vsel %vm919_vm6, %v1291_v5, %v1292_v10 }
 0x262   : > { %2727 = vmatprep.mubr.bf16.mxu1 %v1994_v9  ;;  %v1341_v17 = vadd.f32 %v1292_v10, %v1233_v34  ;;  %v1427_v22 = vsel %vm1044_vm7, %v1425_v19, %v1426_v12  ;;  %v4013_v38 = vunpack.c.h.bf16 %v1524_v24  ;;  %v1340_v25 = vadd.f32 %v1293_v33, %v1232_v56 }
 0x263   : > { %v1429_v27 = vsel %vm1044_vm7, %v1426_v12, %v1428_v11  ;;  %v1479_v28 = vadd.f32 %v1425_v19, %v1339_v13  ;;  %v1580_v29 = vmul.f32 %v3663_v14, %v4005_v4  ;;  %v1581_v32 = vmul.f32 %v3663_v14, %v4007_v16 }
 0x264   : > { %v1481_v31 = vadd.f32 %v1429_v27, %v1341_v17  ;;  %v1582_v23 = vmul.f32 %v3663_v14, %v4009_v21  ;;  %v1603_v46 = vmul.f32 %v3666_v15, %v4007_v16  ;;  %v1480_v36 = vadd.f32 %v1427_v22, %v1340_v25 }
 0x265   : > { %v1503_v39 = vadd.f32 %v1479_v28, %v1154_v0  ;;  %v1604_v40 = vmul.f32 %v3666_v15, %v4009_v21  ;;  %v1716_v37 = vmul.f32 %v3640_v42, %v4007_v16  ;;  %v1717_v52 = vmul.f32 %v3640_v42, %v4009_v21 }
 0x266   : > { %v1505_v43 = vadd.f32 %v1481_v31, %v1156_v3  ;;  %v1640_v59 = vrot.slane %v1603_v46, 1  ;;  %v1718_v41 = vmul.f32 %v3640_v42, %v4013_v38  ;;  %v1504_v44 = vadd.f32 %v1480_v36, %v1155_v1 }
 0x267   : > { %v1641_v48 = vrot.slane %v1604_v40, 1  ;;  %v1774_v55 = vrot.slane %v1716_v37, 2  ;;  %v877_v54 = vmul.f32 %v3935_v18, %v3576_v49  ;;  %v1775_v47 = vrot.slane %v1717_v52, 2 }
 0x268   : > { %v1688_v56 = vadd.f32 %v1640_v59, %v1580_v29  ;;  %v1777_v57 = vrot.slane %v1718_v41, 2  ;;  %v878_v0 = vmul.f32 %v3937_v45, %v3576_v49  ;;  %v879_v34 = vmul.f32 %v3939_v26, %v3576_v49 }
 0x269   : > { %v1642_v3 = vsel %vm919_vm6, %v1640_v59, %v1641_v48  ;;  %v1690_v61 = vadd.f32 %v1641_v48, %v1582_v23  ;;  %v899_v42 = vmul.f32 %v3937_v45, %v3579_v50  ;;  %v1776_v2 = vsel %vm1044_vm7, %v1774_v55, %v1775_v47  ;;  %v4057_v23 = vld [vmem:[%s4345_s13] ss:$0 sm:$0xff] }
 0x26a   : > { %v1689_v1 = vadd.f32 %v1642_v3, %v1581_v32  ;;  %v1778_v18 = vsel %vm1044_vm7, %v1775_v47, %v1777_v57  ;;  %v1828_v35 = vadd.f32 %v1774_v55, %v1688_v56  ;;  %v900_v58 = vmul.f32 %v3939_v26, %v3579_v50 }
 0x26b   : > { %v1830_v62 = vadd.f32 %v1778_v18, %v1690_v61  ;;  %v938_v63 = vrot.slane %v899_v42, 1  ;;  %v1014_v7 = vmul.f32 %v3937_v45, %v3582_v51  ;;  %v1015_v6 = vmul.f32 %v3939_v26, %v3582_v51  ;;  %v4078_v61 = vld [vmem:[#allocation2 + $0x80] sm:$0xff] }
 0x26c   : > { %v1829_v24 = vadd.f32 %v1776_v2, %v1689_v1  ;;  %v1852_v8 = vadd.f32 %v1828_v35, %v1503_v39  ;;  %v1016_v5 = vmul.f32 %v3942_v30, %v3582_v51  ;;  %v939_v10 = vrot.slane %v900_v58, 1  ;;  %v4082_v2 = vld [vmem:[#allocation2 + $0x88] sm:$0xff] }
 0x26d   : > { %v1854_v9 = vadd.f32 %v1830_v62, %v1505_v43  ;;  %v986_v19 = vadd.f32 %v938_v63, %v877_v54  ;;  %v1075_v12 = vrot.slane %v1014_v7, 2  ;;  %v1076_v33 = vrot.slane %v1015_v6, 2 }
 0x26e   : > { %v1853_v13 = vadd.f32 %v1829_v24, %v1504_v44  ;;  %v1876_v11 = vmax.f32 %v1852_v8, 0.0  ;;  %v1078_v17 = vrot.slane %v1016_v5, 2  ;;  %v940_v25 = vsel %vm919_vm6, %v938_v63, %v939_v10 }
 0x26f   : > { %v1878_v22 = vmax.f32 %v1854_v9, 0.0  ;;  %v988_v45 = vadd.f32 %v939_v10, %v879_v34  ;;  %v1127_v27 = vadd.f32 %v1075_v12, %v986_v19  ;;  %v987_v31 = vadd.f32 %v940_v25, %v878_v0 }
 0x270   : > { %v1877_v28 = vmax.f32 %v1853_v13, 0.0  ;;  %v1900_v29 = vmin.f32 %v1876_v11, 6.0  ;;  %v1077_v26 = vsel %vm1044_vm7, %v1075_v12, %v1076_v33  ;;  %v1079_v30 = vsel %vm1044_vm7, %v1076_v33, %v1078_v17 }
 0x271   : > { %v1902_v32 = vmin.f32 %v1878_v22, 6.0  ;;  %v1157_v46 = vadd.f32 %v4057_v23, %v1127_v27  ;;  %v1234_v36 = vmul.f32 %v4005_v4, %v3587_v53  ;;  %v1128_v37 = vadd.f32 %v1077_v26, %v987_v31 }
 0x272   : > { %v1901_v39 = vmin.f32 %v1877_v28, 6.0  ;;  %v1959_v40 = vrot.slane %v1900_v29, 7  ;;  %v1129_v43 = vadd.f32 %v1079_v30, %v988_v45  ;;  %v1235_v52 = vmul.f32 %v4007_v16, %v3587_v53  ;;  %v4106_v29 = vld [vmem:[#allocation8 + $0x8] ss:$0 sm:$0xff] }
 0x273   : > { %v1962_v59 = vrot.slane %v1902_v32, 7  ;;  %v1236_v41 = vmul.f32 %v4009_v21, %v3587_v53  ;;  %v1256_v44 = vmul.f32 %v4007_v16, %v3615_v20  ;;  %v1158_v55 = vadd.f32 %v4057_v23, %v1128_v37 }
 0x274   : > { %v1960_v48 = vrot.slane %v1901_v39, 7  ;;  %v1159_v54 = vadd.f32 %v4057_v23, %v1129_v43  ;;  %v1257_v56 = vmul.f32 %v4009_v21, %v3615_v20  ;;  %v1370_v57 = vmul.f32 %v4007_v16, %v3633_v60 }
 0x275   : > { %v1294_v47 = vrot.slane %v1256_v44, 1  ;;  %v1371_v0 = vmul.f32 %v4009_v21, %v3633_v60  ;;  %v1372_v3 = vmul.f32 %v4013_v38, %v3633_v60  ;;  %v1553_v18 = vunpack.c.l.bf16 %v4078_v61 }
 0x276   : > { %v1961_v34 = vsel %vm1933_vm8, %v1959_v40, %v1960_v48  ;;  %v1963_v42 = vsel %vm1933_vm8, %v1960_v48, %v1962_v59  ;;  %v1295_v1 = vrot.slane %v1257_v56, 1  ;;  %v1430_v58 = vrot.slane %v1370_v57, 2 }
 0x277   : > { %v1995_v35 = vpack.c.bf16 %v1963_v42, %v1961_v34  ;;  %v1342_v62 = vadd.f32 %v1294_v47, %v1234_v36  ;;  %v1431_v63 = vrot.slane %v1371_v0, 2  ;;  %v1433_v8 = vrot.slane %v1372_v3, 2 }
 0x278   : > { %v1296_v7 = vsel %vm919_vm6, %v1294_v47, %v1295_v1  ;;  %v1344_v24 = vadd.f32 %v1295_v1, %v1236_v41  ;;  %v4087_v6 = vunpack.c.h.bf16 %v4078_v61  ;;  %v4091_v19 = vunpack.c.l.bf16 %v4082_v2 }
 0x279   : > { %2728 = vmatmul.mubr.bf16.gmra.mrb[8].mxu1 %v1995_v35  ;;  %v1343_v5 = vadd.f32 %v1296_v7, %v1235_v52  ;;  %v1432_v9 = vsel %vm1044_vm7, %v1430_v58, %v1431_v63  ;;  %v1482_v10 = vadd.f32 %v1430_v58, %v1342_v62  ;;  %v1434_v12 = vsel %vm1044_vm7, %v1431_v63, %v1433_v8 }
 0x27a   : > { %v1556_v13 = vunpack.c.h.bf16 %v4082_v2  ;;  %v1583_v11 = vmul.f32 %v3663_v14, %v1553_v18  ;;  %v1584_v33 = vmul.f32 %v3663_v14, %v4087_v6  ;;  %v1484_v22 = vadd.f32 %v1434_v12, %v1344_v24 }
 0x27b   : > { %v1483_v17 = vadd.f32 %v1432_v9, %v1343_v5  ;;  %v1506_v25 = vadd.f32 %v1482_v10, %v1157_v46  ;;  %v1585_v45 = vmul.f32 %v3663_v14, %v4091_v19  ;;  %v1605_v27 = vmul.f32 %v3666_v15, %v4087_v6 }
 0x27c   : > { %v1606_v28 = vmul.f32 %v3666_v15, %v4091_v19  ;;  %v1719_v31 = vmul.f32 %v4106_v29, %v4087_v6  ;;  %v1720_v26 = vmul.f32 %v4106_v29, %v4091_v19  ;;  %v1508_v30 = vadd.f32 %v1484_v22, %v1159_v54 }
 0x27d   : > { %v1507_v32 = vadd.f32 %v1483_v17, %v1158_v55  ;;  %v1721_v46 = vmul.f32 %v4106_v29, %v1556_v13  ;;  %v880_v36 = vmul.f32 %v4005_v4, %v3576_v49  ;;  %v1643_v39 = vrot.slane %v1605_v27, 1 }
 0x27e   : > { %v1644_v40 = vrot.slane %v1606_v28, 1  ;;  %v1779_v37 = vrot.slane %v1719_v31, 2  ;;  %v1780_v43 = vrot.slane %v1720_v26, 2  ;;  %v881_v52 = vmul.f32 %v4007_v16, %v3576_v49  ;;  %v1527_v26 = vld [vmem:[#allocation2 + $0x90] sm:$0xff] }
 0x27f   : > { %v1782_v59 = vrot.slane %v1721_v46, 2  ;;  %v882_v41 = vmul.f32 %v4009_v21, %v3576_v49  ;;  %v901_v44 = vmul.f32 %v4007_v16, %v3579_v50  ;;  %v1691_v55 = vadd.f32 %v1643_v39, %v1583_v11 }
 0x280   : > { %v1645_v48 = vsel %vm919_vm6, %v1643_v39, %v1644_v40  ;;  %v1693_v54 = vadd.f32 %v1644_v40, %v1585_v45  ;;  %v1781_v4 = vsel %vm1044_vm7, %v1779_v37, %v1780_v43  ;;  %v902_v57 = vmul.f32 %v4009_v21, %v3579_v50 }
 0x281   : > { %v1692_v56 = vadd.f32 %v1645_v48, %v1584_v33  ;;  %v1783_v47 = vsel %vm1044_vm7, %v1780_v43, %v1782_v59  ;;  %v941_v0 = vrot.slane %v901_v44, 1  ;;  %v1831_v3 = vadd.f32 %v1779_v37, %v1691_v55  ;;  %v1528_v59 = vld [vmem:[#allocation2 + $0x98] sm:$0xff] }
 0x282   : > { %v1833_v34 = vadd.f32 %v1783_v47, %v1693_v54  ;;  %v1017_v49 = vmul.f32 %v4007_v16, %v3582_v51  ;;  %v1018_v42 = vmul.f32 %v4009_v21, %v3582_v51  ;;  %v942_v35 = vrot.slane %v902_v57, 1 }
 0x283   : > { %v1832_v1 = vadd.f32 %v1781_v4, %v1692_v56  ;;  %v989_v62 = vadd.f32 %v941_v0, %v880_v36  ;;  %v1019_v58 = vmul.f32 %v4013_v38, %v3582_v51  ;;  %v1855_v63 = vadd.f32 %v1831_v3, %v1506_v25 }
 0x284   : > { %v1857_v7 = vadd.f32 %v1833_v34, %v1508_v30  ;;  %v1080_v24 = vrot.slane %v1017_v49, 2  ;;  %v1081_v8 = vrot.slane %v1018_v42, 2  ;;  %v943_v5 = vsel %vm919_vm6, %v941_v0, %v942_v35 }
 0x285   : > { %v1856_v50 = vadd.f32 %v1832_v1, %v1507_v32  ;;  %v991_v9 = vadd.f32 %v942_v35, %v882_v41  ;;  %v1083_v10 = vrot.slane %v1019_v58, 2  ;;  %v1879_v12 = vmax.f32 %v1855_v63, 0.0 }
 0x286   : > { %v1881_v16 = vmax.f32 %v1857_v7, 0.0  ;;  %v990_v11 = vadd.f32 %v943_v5, %v881_v52  ;;  %v1082_v21 = vsel %vm1044_vm7, %v1080_v24, %v1081_v8  ;;  %v1130_v22 = vadd.f32 %v1080_v24, %v989_v62 }
 0x287   : > { %v1880_v33 = vmax.f32 %v1856_v50, 0.0  ;;  %v1084_v17 = vsel %vm1044_vm7, %v1081_v8, %v1083_v10  ;;  %v1903_v45 = vmin.f32 %v1879_v12, 6.0  ;;  %v1237_v38 = vmul.f32 %v1553_v18, %v3587_v53 }
 0x288   : > { %v1905_v51 = vmin.f32 %v1881_v16, 6.0  ;;  %v1131_v27 = vadd.f32 %v1082_v21, %v990_v11  ;;  %v1132_v28 = vadd.f32 %v1084_v17, %v991_v9  ;;  %v1160_v31 = vadd.f32 %v4057_v23, %v1130_v22 }
 0x289   : > { %v1904_v25 = vmin.f32 %v1880_v33, 6.0  ;;  %v1964_v32 = vrot.slane %v1903_v45, 7  ;;  %v1238_v46 = vmul.f32 %v4087_v6, %v3587_v53  ;;  %v1239_v36 = vmul.f32 %v4091_v19, %v3587_v53 }
 0x28a   : > { %v1967_v30 = vrot.slane %v1905_v51, 7  ;;  %v1258_v40 = vmul.f32 %v4087_v6, %v3615_v20  ;;  %v1259_v61 = vmul.f32 %v4091_v19, %v3615_v20  ;;  %v1373_v18 = vmul.f32 %v4087_v6, %v3633_v60 }
 0x28b   : > { %v1965_v39 = vrot.slane %v1904_v25, 7  ;;  %v1374_v37 = vmul.f32 %v4091_v19, %v3633_v60  ;;  %v1375_v43 = vmul.f32 %v1556_v13, %v3633_v60  ;;  %v1557_v52 = vunpack.c.l.bf16 %v1527_v26 }
 0x28c   : > { %v1558_v53 = vunpack.c.h.bf16 %v1527_v26  ;;  %v1297_v48 = vrot.slane %v1258_v40, 1  ;;  %v1298_v55 = vrot.slane %v1259_v61, 1  ;;  %v1435_v54 = vrot.slane %v1373_v18, 2 }
 0x28d   : > { %v1966_v41 = vsel %vm1933_vm8, %v1964_v32, %v1965_v39  ;;  %v1968_v44 = vsel %vm1933_vm8, %v1965_v39, %v1967_v30  ;;  %v1436_v4 = vrot.slane %v1374_v37, 2  ;;  %v1438_v6 = vrot.slane %v1375_v43, 2 }
 0x28e   : > { %v1996_v20 = vpack.c.bf16 %v1968_v44, %v1966_v41  ;;  %v1299_v56 = vsel %vm919_vm6, %v1297_v48, %v1298_v55  ;;  %v1345_v19 = vadd.f32 %v1297_v48, %v1237_v38  ;;  %v1347_v47 = vadd.f32 %v1298_v55, %v1239_v36 }
 0x28f   : > { %v1559_v57 = vunpack.c.l.bf16 %v1528_v59  ;;  %v1346_v60 = vadd.f32 %v1299_v56, %v1238_v46  ;;  %v1437_v2 = vsel %vm1044_vm7, %v1435_v54, %v1436_v4  ;;  %v1439_v13 = vsel %vm1044_vm7, %v1436_v4, %v1438_v6 }
 0x290   : > { %2731 = vmatprep.mubr.bf16.mxu1 %v1996_v20  ;;  %v1560_v0 = vunpack.c.h.bf16 %v1528_v59  ;;  %v1161_v3 = vadd.f32 %v4057_v23, %v1131_v27  ;;  %v1162_v34 = vadd.f32 %v4057_v23, %v1132_v28  ;;  %v1485_v49 = vadd.f32 %v1435_v54, %v1345_v19  ;;  %v4179_v59 = vld [vmem:[%s4346_s18] ss:$0 sm:$0xff]  ;;  %s3027_s18 = scalar_lea.vmem %s3026_s27, 2048 }
 0x291   : > { %v1487_v42 = vadd.f32 %v1439_v13, %v1347_v47  ;;  %v1586_v1 = vmul.f32 %v3663_v14, %v1557_v52  ;;  %v1588_v35 = vmul.f32 %v3663_v14, %v1559_v57  ;;  %v1607_v62 = vmul.f32 %v3666_v15, %v1558_v53  ;;  %v2619_v52 = vld [vmem:[%s3524_s19 + $0x10] sm:$0xff]   ;;  %p3029_p5 = scmp.lt.s32.totalorder %s3027_s18, %s3021_s7 }
 0x292   : > { %v1608_v58 = vmul.f32 %v3666_v15, %v1559_v57  ;;  %v1486_v63 = vadd.f32 %v1437_v2, %v1346_v60  ;;  %v1587_v7 = vmul.f32 %v3663_v14, %v1558_v53  ;;  %v1722_v24 = vmul.f32 %v4106_v29, %v1558_v53  ;;  %v2618_v53 = vld [vmem:[%s3524_s19 + $0x8] sm:$0xff]  }
 0x293   : > { %v1723_v8 = vmul.f32 %v4106_v29, %v1559_v57  ;;  %v1646_v50 = vrot.slane %v1607_v62, 1  ;;  %v1724_v23 = vmul.f32 %v4106_v29, %v1560_v0  ;;  %v1509_v9 = vadd.f32 %v1485_v49, %v1160_v31  ;;  %v2621_v49 = vld [vmem:[%s3524_s19 + $0x20] sm:$0xff]   ;;  %p3030_p8 = por %p3029_p5, %p3028_p0 }
 0x294   : > { %v1647_v5 = vrot.slane %v1608_v58, 1  ;;  %v1784_v10 = vrot.slane %v1722_v24, 2  ;;  %v1510_v15 = vadd.f32 %v1486_v63, %v1161_v3  ;;  %v1511_v17 = vadd.f32 %v1487_v42, %v1162_v34  ;;  %v2620_v42 = vld [vmem:[%s3524_s19 + $0x18] sm:$0xff]  }
 0x295   : > { %v1785_v12 = vrot.slane %v1723_v8, 2  ;;  %v1694_v11 = vadd.f32 %v1646_v50, %v1586_v1  ;;  %v1787_v33 = vrot.slane %v1724_v23, 2  ;;  %v2552_v48 = vunpack.c.l.bf16 %v2619_v52  ;;  %p3031_p12 = pnand %p3030_p8, %p3024_p11 }
 0x296   : > { %v1648_v16 = vsel %vm919_vm6, %v1646_v50, %v1647_v5  ;;  %v1696_v21 = vadd.f32 %v1647_v5, %v1588_v35  ;;  %v2553_v20 = vunpack.c.h.bf16 %v2619_v52  ;;  %v2548_v4 = vunpack.c.l.bf16 %v2618_v53 }
 0x297   : > { %v1695_v22 = vadd.f32 %v1648_v16, %v1587_v7  ;;  %v1786_v14 = vsel %vm1044_vm7, %v1784_v10, %v1785_v12  ;;  %v1788_v45 = vsel %vm1044_vm7, %v1785_v12, %v1787_v33  ;;  %v1834_v51 = vadd.f32 %v1784_v10, %v1694_v11 }
 0x298   : > { %v1836_v25 = vadd.f32 %v1788_v45, %v1696_v21  ;;  %v2549_v56 = vunpack.c.h.bf16 %v2618_v53  ;;  %v2560_v62 = vunpack.c.l.bf16 %v2621_v49  ;;  %v2561_v63 = vunpack.c.h.bf16 %v2621_v49 }
 0x299   : > { %v1835_v38 = vadd.f32 %v1786_v14, %v1695_v22  ;;  %v1858_v27 = vadd.f32 %v1834_v51, %v1509_v9  ;;  %v2556_v24 = vunpack.c.l.bf16 %v2620_v42  ;;  %v2557_v50 = vunpack.c.h.bf16 %v2620_v42 }
 0x29a   : > { %v1860_v28 = vadd.f32 %v1836_v25, %v1511_v17  ;;  %v2622_v17 = vld [vmem:[%s3524_s19 + $0x28] sm:$0xff]  }
 0x29b   : > { %v1859_v29 = vadd.f32 %v1835_v38, %v1510_v15  ;;  %v1882_v31 = vmax.f32 %v1858_v27, 0.0  ;;  %v2623_v15 = vld [vmem:[%s3524_s19 + $0x30] sm:$0xff]   ;;  %v2564_v27 = vunpack.c.l.bf16 %v2622_v17 }
 0x29c   : > { %v1884_v32 = vmax.f32 %v1860_v28, 0.0  ;;  %v2568_v45 = vunpack.c.l.bf16 %v2623_v15  ;;  %v2569_v38 = vunpack.c.h.bf16 %v2623_v15  ;;  %v2565_v28 = vunpack.c.h.bf16 %v2622_v17 }
 0x29d   : > { %v1883_v26 = vmax.f32 %v1859_v29, 0.0  ;;  %v1906_v30 = vmin.f32 %v1882_v31, 6.0 }
 0x29e   : > { %v1908_v36 = vmin.f32 %v1884_v32, 6.0 }
 0x29f   : > { %v1907_v46 = vmin.f32 %v1883_v26, 6.0  ;;  %v1969_v39 = vrot.slane %v1906_v30, 7 }
 0x2a0   : > { %v1972_v61 = vrot.slane %v1908_v36, 7 }
 0x2a1   : > { %v1970_v40 = vrot.slane %v1907_v46, 7 }
 0x2a3   : > { %v1971_v18 = vsel %vm1933_vm8, %v1969_v39, %v1970_v40  ;;  %v1973_v37 = vsel %vm1933_vm8, %v1970_v40, %v1972_v61 }
 0x2a4   : > { %v1997_v43 = vpack.c.bf16 %v1973_v37, %v1971_v18  ;;  %v2625_v18 = vld [vmem:[%s3524_s19 + $0x40] sm:$0xff]   ;;  %v2624_v37 = vld [vmem:[%s3524_s19 + $0x38] sm:$0xff]  }
 0x2a5   : > { %v2576_v53 = vunpack.c.l.bf16 %v2625_v18 }
 0x2a6   : > { %2732 = vmatmul.mubr.bf16.gmra.mrb[12].mxu1 %v1997_v43 }
 0x2f1   : > { %v2721_v41 = vpop.f32.mrb[0].mxu1 }
 0x2f2   : > { %v2112_v44 = vadd.f32 %v2721_v41, %v4179_v59  ;;  %v2103_v55 = vpop.f32.mrb[1].mxu1 }
 0x2f3   : > { %v2104_v54 = vadd.f32 %v4179_v59, %v2103_v55  ;;  %v2722_v6 = vpop.f32.mrb[2].mxu1  ;;  %v2572_v55 = vunpack.c.l.bf16 %v2624_v37 }
 0x2f4   : > { %v2115_v19 = vadd.f32 %v2722_v6, %v4179_v59  ;;  %v2106_v47 = vpop.f32.mrb[3].mxu1  ;;  %v2204_v60 = vadd.f32 %v2552_v48, %v2112_v44  ;;  %v2577_v44 = vunpack.c.h.bf16 %v2625_v18 }
 0x2f5   : > { %v2107_v57 = vadd.f32 %v4179_v59, %v2106_v47  ;;  %v2202_v13 = vadd.f32 %v2548_v4, %v2104_v54  ;;  %v2573_v54 = vunpack.c.h.bf16 %v2624_v37 }
 0x2f6   : > { %v2205_v2 = vadd.f32 %v2553_v20, %v2115_v19 }
 0x2f7   : > { %v2203_v0 = vadd.f32 %v2549_v56, %v2107_v57 }
 0x2f8   : > { %v2586_v3 = vpack.c.bf16 %v2205_v2, %v2204_v60 }
 0x2f9   : > { %v2581_v34 = vpack.c.bf16 %v2203_v0, %v2202_v13 }
 0x2fa   : > { %2626 = vst [vmem:[%s3562_s22 + $0x8] sm:$0xff] %v2586_v3  }
 0x2fb   : > { %2582 = vst [vmem:[%s3562_s22] sm:$0xff] %v2581_v34  }
 0x31e   : > { %v2725_v1 = vpop.f32.mrb[4].mxu1 }
 0x31f   : > { %v2128_v35 = vadd.f32 %v2725_v1, %v4179_v59  ;;  %v2119_v58 = vpop.f32.mrb[5].mxu1 }
 0x320   : > { %v2120_v7 = vadd.f32 %v4179_v59, %v2119_v58  ;;  %v2726_v8 = vpop.f32.mrb[6].mxu1 }
 0x321   : > { %v2131_v5 = vadd.f32 %v2726_v8, %v4179_v59  ;;  %v2122_v23 = vpop.f32.mrb[7].mxu1  ;;  %v2208_v10 = vadd.f32 %v2560_v62, %v2128_v35 }
 0x322   : > { %v2123_v9 = vadd.f32 %v4179_v59, %v2122_v23  ;;  %v2206_v16 = vadd.f32 %v2556_v24, %v2120_v7 }
 0x323   : > { %v2209_v12 = vadd.f32 %v2561_v63, %v2131_v5 }
 0x324   : > { %v2207_v11 = vadd.f32 %v2557_v50, %v2123_v9 }
 0x325   : > { %v2596_v21 = vpack.c.bf16 %v2209_v12, %v2208_v10 }
 0x326   : > { %v2591_v33 = vpack.c.bf16 %v2207_v11, %v2206_v16 }
 0x327   : > { %2628 = vst [vmem:[%s3562_s22 + $0x18] sm:$0xff] %v2596_v21  }
 0x328   : > { %2627 = vst [vmem:[%s3562_s22 + $0x10] sm:$0xff] %v2591_v33  }
 0x34c   : > { %v2729_v22 = vpop.f32.mrb[8].mxu1 }
 0x34d   : > { %v2144_v14 = vadd.f32 %v2729_v22, %v4179_v59  ;;  %v2135_v51 = vpop.f32.mrb[9].mxu1 }
 0x34e   : > { %v2136_v25 = vadd.f32 %v4179_v59, %v2135_v51  ;;  %v2730_v29 = vpop.f32.mrb[10].mxu1 }
 0x34f   : > { %v2147_v31 = vadd.f32 %v2730_v29, %v4179_v59  ;;  %v2138_v26 = vpop.f32.mrb[11].mxu1  ;;  %v2212_v30 = vadd.f32 %v2568_v45, %v2144_v14 }
 0x350   : > { %v2139_v32 = vadd.f32 %v4179_v59, %v2138_v26  ;;  %v2210_v36 = vadd.f32 %v2564_v27, %v2136_v25 }
 0x351   : > { %v2213_v46 = vadd.f32 %v2569_v38, %v2147_v31 }
 0x352   : > { %v2211_v39 = vadd.f32 %v2565_v28, %v2139_v32 }
 0x353   : > { %v2606_v40 = vpack.c.bf16 %v2213_v46, %v2212_v30 }
 0x354   : > { %v2601_v61 = vpack.c.bf16 %v2211_v39, %v2210_v36 }
 0x355   : > { %2630 = vst [vmem:[%s3562_s22 + $0x28] sm:$0xff] %v2606_v40  }
 0x356   : > { %2629 = vst [vmem:[%s3562_s22 + $0x20] sm:$0xff] %v2601_v61  }
 0x379   : > { %v2733_v43 = vpop.f32.mrb[12].mxu1 }
 0x37a   : > { %v2160_v52 = vadd.f32 %v2733_v43, %v4179_v59  ;;  %v2151_v41 = vpop.f32.mrb[13].mxu1 }
 0x37b   : > { %v2152_v48 = vadd.f32 %v4179_v59, %v2151_v41  ;;  %v2734_v20 = vpop.f32.mrb[14].mxu1 }
 0x37c   : > { %v2163_v4 = vadd.f32 %v2734_v20, %v4179_v59  ;;  %v2154_v6 = vpop.f32.mrb[15].mxu1  ;;  %v2216_v19 = vadd.f32 %v2576_v53, %v2160_v52 }
 0x37d   : > { %v2155_v56 = vadd.f32 %v4179_v59, %v2154_v6  ;;  %v2214_v57 = vadd.f32 %v2572_v55, %v2152_v48 }
 0x37e   : > { %v2217_v47 = vadd.f32 %v2577_v44, %v2163_v4 }
 0x37f   : > { %v2215_v60 = vadd.f32 %v2573_v54, %v2155_v56 }
 0x380   : > { %v2616_v2 = vpack.c.bf16 %v2217_v47, %v2216_v19 }
 0x381   : > { %v2611_v13 = vpack.c.bf16 %v2215_v60, %v2214_v57 }
 0x382   : > { %2632 = vst [vmem:[%s3562_s22 + $0x38] sm:$0xff] %v2616_v2  }
 0x383   : > { %2631 = vst [vmem:[%s3562_s22 + $0x30] sm:$0xff] %v2611_v13  }
 0x384   : > { %3034 = shalt.err (!%p3031_p12)
}
 0x385   : > { %s3035_s5 = scalar_lea.hbm %s4217_s6, 1024  ;;  %s3039_s20 = scalar_lea.hbm %s4350_s4, 4096 }
 0x386   : > { %p3036_p2 = scmp.ne.s32.totalorder %s4217_s6, %s3035_s5  ;;  %p3040_p1 = scmp.lt.u32.totalorder %s4217_s6, %s4350_s4 }
 0x387   : > { %p3041_p4 = scmp.lt.u32.totalorder %s3039_s20, %s3035_s5  ;;  %p3043_p7 = scmp.lt.u32.totalorder %s3035_s5, %s4217_s6 }
 0x388   : > { %p3037_p6 = pnand %p3036_p2, %p4351_p9 }
 0x389   : > { %p3042_p3 = por %p3041_p4, %p3040_p1 }
 0x38a   : > { %p3038_p10 = pneg %p3037_p6 }
 0x38b   : > { %p3044_p13 = por %p3043_p7, %p3042_p3 }
 0x38d   : > { %p3045_p11 = pnand %p3044_p13, %p3038_p10 }
 0x38f   : > { %3048 = shalt.err (!%p3045_p11)
}
 0x390   : > { %s3164_s16 = smov 64   ;;  %s3165_s19 = smov 4  }
 0x391   : > { %2752 = dma.vmem_to_hbm [thread:$0]  (%p4351_p9), %s4219_s14, 1024, %s4217_s6, %s4225_s23, %s3164_s16, %s3164_s16, %s3165_s19  }
 0x392 PF: > { %s4352_s24 = sld [smem:[#allocation16_spill]]  ;;  %s4353_s8 = sld [smem:[#allocation19_spill]] }
 0x393   : > { %p2779_p0 = scmp.ge.s32.totalorder %s3151_s11, 2 }
 0x398   : > { %s2330_s7 = sand.u32 1, %s4352_s24   ;;  %p4354_p5 = scmp.ne.s32.totalorder %s4353_s8, 0 }
 0x399   : > { %s2331_s12 = scalar_lea.sflag [#allocation5], %s2330_s7 }
 0x39a   : > { %p2769_p8 = pnand %p2779_p0, %p4354_p5 }
 0x39c   : > { %3106 = dma.done.wait (!%p2769_p8), %s2331_s12, 1024  }
 0x39d   : > { %3108 = vsyncadd (!%p2769_p8), %s2331_s12, 4294966272  ;;  %s25_s11 = sadd.s32 1, %s3151_s11   ;;  %s4355_s14 = sld [smem:[#allocation20_spill]] }
 0x39e   : > { %p22_p12 = scmp.ge.s32.totalorder %s25_s11, 6   ;;  %s4356_s6 = sld [smem:[#allocation21_spill]] }
 0x39f   : > { %s4357_s24 = smov %s3115_s25  ;;  %s4358_s25 = smov %s3119_s26 }
 0x3a0   : > { %s4359_s26 = smov %s3400_s1  ;;  %s4360_s27 = smov %s3127_s28 }
 0x3a1   : > { %s4361_s28 = smov %s3131_s29  ;;  %s4362_s29 = smov %s3395_s21 }
 0x3a2   : > { %s4363_s30 = smov %s3143_s9  ;;  %s4364_s8 = smov %s3147_s10 }
 0x3a3   : > { %s4365_s9 = smov %s4355_s14  ;;  %24 = sbr.rel (!%p22_p12) target bundleno = 18 (0x12), region = 118 }
 0x3a4   : > { %s4366_s10 = smov %s4356_s6 }
 0x3aa   :  { %2336 = vsyncpa [#allocation4], 1 }
 0x3ab   :  { %2338 = vsyncpa [#allocation4 + $0x1], 1 }
 0x3ac   :  { %2339 = vsyncpa [#allocation7], 1 }
 0x3ad   :  { %2340 = vsyncpa [#allocation10], 1 }
 0x3ae   :  { %2341 = vsyncpa [#allocation5], 1 }
 0x3af   :  { %2343 = vsyncpa [#allocation5 + $0x1], 1 }

</bundles_post_ra>
